<compile_context>
chip_gen: v5e
topology: v5e:2x2
jax: 0.10.0
libtpu: 0.0.40
codegen_flags: <defaults>
</compile_context>

<pallas_src>
import functools

import jax
import jax.numpy as jnp
import numpy as np
from jax import lax
from jax.experimental import pallas as pl
from jax.experimental.pallas import tpu as pltpu


def _cell_from_gates(gates, c, H):
    """LSTM cell from precomputed gate pre-activations.

    Gate columns are laid out (i, f, o, g) and the g block is pre-scaled by 2
    in the wrapper, so one sigmoid over the whole (bs, 4H) row handles every
    gate and tanh(g_pre) is recovered with a single VPU fma:
        tanh(x) = 2*sigmoid(2x) - 1.
    """
    s = jax.nn.sigmoid(gates)                     # single EUP region (bs, 4H)
    i = s[:, 0 * H:1 * H]
    f = s[:, 1 * H:2 * H]
    o = s[:, 2 * H:3 * H]
    g = 2.0 * s[:, 3 * H:4 * H] - 1.0             # == tanh(g_pre)
    c_new = f * c + i * g
    h_new = o * jnp.tanh(c_new)
    return h_new, c_new


def controller_kernel(*refs, H, B, L, tanh_constant, inv_temp, has_gumbel):
    if has_gumbel:
        (base0_ref, base_ref, emb_tbl_ref, w_hh0_t_ref, w_ih1_t_ref, b1_ref,
         w_hh1_t_ref, w_soft_t_ref, gumbel_ref,
         arc_ref, logp_ref, ent_ref) = refs
    else:
        (base0_ref, base_ref, emb_tbl_ref, w_hh0_t_ref, w_ih1_t_ref, b1_ref,
         w_hh1_t_ref, w_soft_t_ref,
         arc_ref, logp_ref, ent_ref) = refs
        gumbel_ref = None

    base0 = base0_ref[...]        # (bs, 4H) step-0 layer-0 gates (x-part + b0)
    base = base_ref[...]          # (bs, 4H) 0.5*gemb@w_ih0^T + b0  (steps >= 1)
    emb_tbl = emb_tbl_ref[...]    # (B, 4H)  0.5*w_emb@w_ih0^T
    w_hh0_t = w_hh0_t_ref[...]    # (H, 4H)
    w_ih1_t = w_ih1_t_ref[...]    # (H, 4H)
    b1 = b1_ref[...]              # (1, 4H)
    w_hh1_t = w_hh1_t_ref[...]    # (H, 4H)
    w_soft_t = w_soft_t_ref[...]  # (H, B)

    bs = base.shape[0]
    c0 = jnp.zeros((bs, H), jnp.float32)
    c1 = jnp.zeros((bs, H), jnp.float32)
    hh0 = hh1 = one_hot = None

    idxs = lax.broadcasted_iota(jnp.int32, (bs, B), 1)          # hoisted

    # 3*L (bs,1) columns stay live until the final stores; fine for small L.
    # TODO(synk): for L >~ 8 write per-step results into a (bs, L) VMEM
    # scratch instead to bound vreg pressure in the unrolled tail.
    arc_cols, logp_cols, ent_cols = [], [], []
    for step in range(L):     # static unroll; recurrence is data-dependent
        # ---- layer-0 cell.  x-projection hoisted into emb_tbl/base; the
        # h0 @ w_hh0 part (hh0) was issued at the end of the previous step,
        # so only the tiny K=B one_hot matmul sits behind the argmax.
        if step == 0:
            gates0 = base0                              # h0_prev = c0 = 0
        else:
            gates0 = (jnp.dot(one_hot, emb_tbl,
                              preferred_element_type=jnp.float32)
                      + base + hh0)
        h0, c0 = _cell_from_gates(gates0, c0, H)

        # ---- layer-1 cell (its hh1 part was also issued last step).
        gates1 = jnp.dot(h0, w_ih1_t, preferred_element_type=jnp.float32) + b1
        if step > 0:
            gates1 = gates1 + hh1
        h1, c1 = _cell_from_gates(gates1, c1, H)

        # Issue next step's hidden-state projections now: they depend only on
        # h0/h1, so their MXU round-trips overlap the softmax/argmax/entropy
        # chain below instead of serializing behind it next step.
        if step + 1 < L:
            hh0 = jnp.dot(h0, w_hh0_t, preferred_element_type=jnp.float32)
            hh1 = jnp.dot(h1, w_hh1_t, preferred_element_type=jnp.float32)

        # ---- logits (w_soft has no bias)
        logit = jnp.dot(h1, w_soft_t, preferred_element_type=jnp.float32)
        if inv_temp is not None:
            logit = logit * inv_temp                    # static 1/temperature
        if tanh_constant is not None:
            logit = tanh_constant * jnp.tanh(logit)

        # ---- argmax / Gumbel-max sample: ONE max reduce per step.  Its
        # result doubles as the logsumexp shift (exact max of logit in the
        # deterministic path; a valid, overflow-safe shift in the Gumbel path
        # since the clipped noise keeps logit - score_max <= ~2.7).
        if has_gumbel:
            score = logit + gumbel_ref[step]
        else:
            score = logit
        score_max = jnp.max(score, axis=1, keepdims=True)       # (bs, 1)
        m = score_max

        # first-max tie behavior == torch argmax (keep the masked-min form)
        branch2d = jnp.min(jnp.where(score == score_max, idxs, B),
                           axis=1, keepdims=True)               # (bs, 1) int32
        one_hot = (idxs == branch2d).astype(jnp.float32)        # (bs, B)

        # ---- Categorical(logits=logit): log_prob & entropy, one shared exp.
        p_un = jnp.exp(logit - m)
        s = jnp.sum(p_un, axis=1, keepdims=True)
        s_pl = jnp.sum(p_un * logit, axis=1, keepdims=True)
        if has_gumbel:
            logit_sel = jnp.sum(one_hot * logit, axis=1, keepdims=True)
        else:
            logit_sel = score_max         # argmax of logit -> selected == max
        lse = m + jnp.log(s)
        log_prob = logit_sel - lse                               # (bs, 1)
        entropy = lse - s_pl / s          # exact reciprocal (tolerance-bound)

        arc_cols.append(branch2d)
        logp_cols.append(log_prob)
        ent_cols.append(entropy)

    # single lane-dense store per output
    arc_ref[...] = jnp.concatenate(arc_cols, axis=1)
    logp_ref[...] = jnp.concatenate(logp_cols, axis=1)
    ent_ref[...] = jnp.concatenate(ent_cols, axis=1)


def _reorder_and_scale_gates(m, H, axis=0):
    """PyTorch gate blocks (i, f, g, o) -> (i, f, o, g), g block scaled by 2."""
    i_f = lax.slice_in_dim(m, 0, 2 * H, axis=axis)
    g = lax.slice_in_dim(m, 2 * H, 3 * H, axis=axis)
    o = lax.slice_in_dim(m, 3 * H, 4 * H, axis=axis)
    return jnp.concatenate([i_f, o, 2.0 * g], axis=axis)


def _prep_lstm_layer(w_ih, w_hh, b_ih, b_hh, H):
    """Reorder/scale gates; fuse the two biases into one row."""
    w_ih_r = _reorder_and_scale_gates(w_ih, H, axis=0)        # (4H, H)
    w_hh_r = _reorder_and_scale_gates(w_hh, H, axis=0)        # (4H, H)
    b_r = _reorder_and_scale_gates(b_ih + b_hh, H, axis=0)    # (4H,)
    return w_ih_r, w_hh_r, b_r


def pagan_controller_forward(class_ids, params, *, num_layers, num_branches,
                             lstm_size, tanh_constant=1.5, temperature=-1,
                             determine_sample=False, key=None):
    """Returns (sample_arc, sample_log_prob, sample_entropy, sample_prob)."""
    H, B, L = lstm_size, num_branches, num_layers
    class_ids = jnp.asarray(class_ids, jnp.int32)
    bs = class_ids.shape[0]
    hi = jax.lax.Precision.HIGHEST     # keep wrapper prep matmuls f32-accurate

    # glue: embedding gather + weight prep (plain JAX, runs once)
    gemb_cls = params["g_emb"][class_ids]                      # (bs, H)
    w_emb = params["w_emb"]                                    # (B, H)

    w_ih0_r, w_hh0_r, b0_r = _prep_lstm_layer(
        params["w_ih_l0"], params["w_hh_l0"],
        params["b_ih_l0"], params["b_hh_l0"], H)
    w_ih1_r, w_hh1_r, b1_r = _prep_lstm_layer(
        params["w_ih_l1"], params["w_hh_l1"],
        params["b_ih_l1"], params["b_hh_l1"], H)

    # Hoist the layer-0 x-projection out of the recurrence:
    #   x_t = (w_emb[branch] + gemb)/2   =>   x_t @ w_ih0^T
    #       = one_hot @ emb_tbl + (base - b0)           (steps >= 1)
    xproj = jnp.dot(gemb_cls, w_ih0_r.T, precision=hi)         # (bs, 4H)
    base0 = xproj + b0_r[None, :]                              # step 0 (x=gemb)
    base = 0.5 * xproj + b0_r[None, :]                         # steps >= 1
    emb_tbl = 0.5 * jnp.dot(w_emb, w_ih0_r.T, precision=hi)    # (B, 4H)

    w_hh0_t = w_hh0_r.T                                        # (H, 4H)
    w_ih1_t = w_ih1_r.T                                        # (H, 4H)
    w_hh1_t = w_hh1_r.T                                        # (H, 4H)
    b1 = b1_r.reshape(1, 4 * H)
    w_soft_t = params["w_soft"].T                              # (H, B)

    has_gumbel = (not determine_sample) and (key is not None)
    inv_temp = (1.0 / float(temperature)) if temperature > 0 else None

    in_arrays = [base0, base, emb_tbl, w_hh0_t, w_ih1_t, b1, w_hh1_t, w_soft_t]
    if has_gumbel:
        u = jax.random.uniform(key, (L, bs, B), jnp.float32,
                               minval=1e-6, maxval=1.0 - 1e-6)
        in_arrays.append(-jnp.log(-jnp.log(u)))                # Gumbel noise
    # deterministic path: no all-zeros gumbel DMA'd for nothing

    kernel = functools.partial(
        controller_kernel, H=H, B=B, L=L, tanh_constant=tanh_constant,
        inv_temp=inv_temp, has_gumbel=has_gumbel)

    def full_spec(shape):
        return pl.BlockSpec(shape, lambda i, _n=len(shape): (0,) * _n)

    in_specs = [full_spec(tuple(a.shape)) for a in in_arrays]
    out_specs = [full_spec((bs, L)) for _ in range(3)]
    out_shape = [jax.ShapeDtypeStruct((bs, L), jnp.int32),
                 jax.ShapeDtypeStruct((bs, L), jnp.float32),
                 jax.ShapeDtypeStruct((bs, L), jnp.float32)]

    arc, logp, ent = pl.pallas_call(
        kernel,
        out_shape=out_shape,
        grid_spec=pltpu.PrefetchScalarGridSpec(
            num_scalar_prefetch=0,
            grid=(1,),                   # single invocation; loop unrolled inside
            in_specs=in_specs,
            out_specs=out_specs),
        compiler_params=pltpu.CompilerParams(
            dimension_semantics=("arbitrary",)),
    )(*in_arrays)
    return arc, logp, ent, jnp.exp(logp)


def pagan_controller_reference(class_ids, params, *, num_layers, num_branches,
                               lstm_size, tanh_constant=1.5, temperature=-1):
    """Pure-JAX reference of the deterministic (argmax) path."""
    H, B = lstm_size, num_branches
    class_ids = jnp.asarray(class_ids, jnp.int32)
    gemb_cls = params["g_emb"][class_ids]
    x = gemb_cls
    bs = x.shape[0]
    h = [jnp.zeros((bs, H)), jnp.zeros((bs, H))]
    c = [jnp.zeros((bs, H)), jnp.zeros((bs, H))]
    arcs, logps, ents = [], [], []

    def cell(x, h, c, w_ih, w_hh, b_ih, b_hh):
        g = x @ w_ih.T + h @ w_hh.T + b_ih + b_hh
        i, f, gg, o = (jax.nn.sigmoid(g[:, 0:H]), jax.nn.sigmoid(g[:, H:2 * H]),
                       jnp.tanh(g[:, 2 * H:3 * H]), jax.nn.sigmoid(g[:, 3 * H:]))
        cn = f * c + i * gg
        return o * jnp.tanh(cn), cn

    for _ in range(num_layers):
        h[0], c[0] = cell(x, h[0], c[0], params["w_ih_l0"], params["w_hh_l0"],
                          params["b_ih_l0"], params["b_hh_l0"])
        h[1], c[1] = cell(h[0], h[1], c[1], params["w_ih_l1"], params["w_hh_l1"],
                          params["b_ih_l1"], params["b_hh_l1"])
        logit = h[1] @ params["w_soft"].T
        if temperature > 0:
            logit = logit / temperature
        if tanh_constant is not None:
            logit = tanh_constant * jnp.tanh(logit)
        branch = jnp.argmax(logit, axis=1).astype(jnp.int32)
        logp = jax.nn.log_softmax(logit, axis=1)
        p = jnp.exp(logp)
        arcs.append(branch)
        logps.append(jnp.take_along_axis(logp, branch[:, None], axis=1)[:, 0])
        ents.append(-jnp.sum(p * logp, axis=1))
        x = (params["w_emb"][branch] + gemb_cls) / 2.0
    return (jnp.stack(arcs, axis=1), jnp.stack(logps, axis=1),
            jnp.stack(ents, axis=1))


def init_params(key, *, n_classes, num_branches, lstm_size):
    """Deterministic uniform(-0.1, 0.1) init (mirrors _reset_params)."""
    H = lstm_size
    names_shapes = [
        ("g_emb", (n_classes, H)),
        ("w_emb", (num_branches, H)),
        ("w_soft", (num_branches, H)),        # nn.Linear weight (out, in)
        ("w_ih_l0", (4 * H, H)), ("w_hh_l0", (4 * H, H)),
        ("b_ih_l0", (4 * H,)), ("b_hh_l0", (4 * H,)),
        ("w_ih_l1", (4 * H, H)), ("w_hh_l1", (4 * H, H)),
        ("b_ih_l1", (4 * H,)), ("b_hh_l1", (4 * H,)),
    ]
    keys = jax.random.split(key, len(names_shapes))
    return {name: jax.random.uniform(k, shape, jnp.float32, -0.1, 0.1)
            for (name, shape), k in zip(names_shapes, keys)}


if __name__ == "__main__":
    n_classes, num_layers, num_branches, lstm_size = 4, 4, 6, 32
    params = init_params(jax.random.PRNGKey(0), n_classes=n_classes,
                         num_branches=num_branches, lstm_size=lstm_size)
    class_ids = jnp.array([0, 1], dtype=jnp.int32)   # batch = 2

    # deterministic (argmax) path — check against pure-JAX reference
    arc, logp, ent, prob = pagan_controller_forward(
        class_ids, params, num_layers=num_layers, num_branches=num_branches,
        lstm_size=lstm_size, determine_sample=True)
    jax.block_until_ready((arc, logp, ent, prob))

    ref_arc, ref_logp, ref_ent = pagan_controller_reference(
        class_ids, params, num_layers=num_layers, num_branches=num_branches,
        lstm_size=lstm_size)
    # (arc equality holds up to float tie behavior; measure-zero with random
    # params since the kernel reassociates the gate arithmetic.)
    np.testing.assert_array_equal(np.asarray(arc), np.asarray(ref_arc))
    np.testing.assert_allclose(np.asarray(logp), np.asarray(ref_logp),
                               rtol=1e-5, atol=1e-5)
    np.testing.assert_allclose(np.asarray(ent), np.asarray(ref_ent),
                               rtol=1e-5, atol=1e-5)

    # stochastic path (Gumbel-max sampling inside the kernel)
    arc_s, logp_s, ent_s, prob_s = pagan_controller_forward(
        class_ids, params, num_layers=num_layers, num_branches=num_branches,
        lstm_size=lstm_size, determine_sample=False,
        key=jax.random.PRNGKey(1))
    jax.block_until_ready((arc_s, logp_s, ent_s, prob_s))

    print("KERNEL_OK")
</pallas_src>

<mosaic_0001>
module attributes {stable_mosaic.version = 11 : i64} {
  func.func @controller_kernel(%arg0: i32, %arg1: memref<2x128xf32, #tpu.memory_space<vmem>>, %arg2: memref<2x128xf32, #tpu.memory_space<vmem>>, %arg3: memref<6x128xf32, #tpu.memory_space<vmem>>, %arg4: memref<32x128xf32, #tpu.memory_space<vmem>>, %arg5: memref<32x128xf32, #tpu.memory_space<vmem>>, %arg6: memref<1x128xf32, #tpu.memory_space<vmem>>, %arg7: memref<32x128xf32, #tpu.memory_space<vmem>>, %arg8: memref<32x6xf32, #tpu.memory_space<vmem>>, %arg9: memref<2x4xi32, #tpu.memory_space<vmem>>, %arg10: memref<2x4xf32, #tpu.memory_space<vmem>>, %arg11: memref<2x4xf32, #tpu.memory_space<vmem>>) attributes {dimension_semantics = [#tpu.dimension_semantics<arbitrary>], iteration_bounds = array<i64: 1>, scalar_prefetch = 0 : i64, scratch_operands = 0 : i64, tpu.core_type = #tpu.core_type<tc>, window_params = [{pipeline_mode = #tpu.pipeline_mode<synchronous>, transform_indices = @transform_0, window_bounds = array<i64: 2, 128>}, {pipeline_mode = #tpu.pipeline_mode<synchronous>, transform_indices = @transform_1, window_bounds = array<i64: 2, 128>}, {pipeline_mode = #tpu.pipeline_mode<synchronous>, transform_indices = @transform_2, window_bounds = array<i64: 6, 128>}, {pipeline_mode = #tpu.pipeline_mode<synchronous>, transform_indices = @transform_3, window_bounds = array<i64: 32, 128>}, {pipeline_mode = #tpu.pipeline_mode<synchronous>, transform_indices = @transform_4, window_bounds = array<i64: 32, 128>}, {pipeline_mode = #tpu.pipeline_mode<synchronous>, transform_indices = @transform_5, window_bounds = array<i64: 1, 128>}, {pipeline_mode = #tpu.pipeline_mode<synchronous>, transform_indices = @transform_6, window_bounds = array<i64: 32, 128>}, {pipeline_mode = #tpu.pipeline_mode<synchronous>, transform_indices = @transform_7, window_bounds = array<i64: 32, 6>}, {pipeline_mode = #tpu.pipeline_mode<synchronous>, transform_indices = @transform_8, window_bounds = array<i64: 2, 4>}, {pipeline_mode = #tpu.pipeline_mode<synchronous>, transform_indices = @transform_9, window_bounds = array<i64: 2, 4>}, {pipeline_mode = #tpu.pipeline_mode<synchronous>, transform_indices = @transform_10, window_bounds = array<i64: 2, 4>}]} {
    %c0 = arith.constant 0 : index
    %c0_0 = arith.constant 0 : index
    %0 = vector.load %arg1[%c0, %c0_0] : memref<2x128xf32, #tpu.memory_space<vmem>>, vector<2x128xf32>
    %c0_1 = arith.constant 0 : index
    %c0_2 = arith.constant 0 : index
    %1 = vector.load %arg2[%c0_1, %c0_2] : memref<2x128xf32, #tpu.memory_space<vmem>>, vector<2x128xf32>
    %c0_3 = arith.constant 0 : index
    %c0_4 = arith.constant 0 : index
    %2 = vector.load %arg3[%c0_3, %c0_4] : memref<6x128xf32, #tpu.memory_space<vmem>>, vector<6x128xf32>
    %c0_5 = arith.constant 0 : index
    %c0_6 = arith.constant 0 : index
    %3 = vector.load %arg4[%c0_5, %c0_6] : memref<32x128xf32, #tpu.memory_space<vmem>>, vector<32x128xf32>
    %c0_7 = arith.constant 0 : index
    %c0_8 = arith.constant 0 : index
    %4 = vector.load %arg5[%c0_7, %c0_8] : memref<32x128xf32, #tpu.memory_space<vmem>>, vector<32x128xf32>
    %c0_9 = arith.constant 0 : index
    %c0_10 = arith.constant 0 : index
    %5 = vector.load %arg6[%c0_9, %c0_10] : memref<1x128xf32, #tpu.memory_space<vmem>>, vector<1x128xf32>
    %c0_11 = arith.constant 0 : index
    %c0_12 = arith.constant 0 : index
    %6 = vector.load %arg7[%c0_11, %c0_12] : memref<32x128xf32, #tpu.memory_space<vmem>>, vector<32x128xf32>
    %c0_13 = arith.constant 0 : index
    %c0_14 = arith.constant 0 : index
    %7 = vector.load %arg8[%c0_13, %c0_14] : memref<32x6xf32, #tpu.memory_space<vmem>>, vector<32x6xf32>
    %cst = arith.constant 0.000000e+00 : f32
    %8 = vector.broadcast %cst : f32 to vector<2x32xf32>
    %cst_15 = arith.constant 0.000000e+00 : f32
    %9 = vector.broadcast %cst_15 : f32 to vector<2x32xf32>
    %10 = tpu.iota {dimensions = array<i32: 1>} : vector<2x6xi32>
    %11 = arith.negf %0 : vector<2x128xf32>
    %12 = math.exp %11 : vector<2x128xf32>
    %cst_16 = arith.constant 1.000000e+00 : f32
    %13 = vector.broadcast %cst_16 : f32 to vector<2x128xf32>
    %14 = arith.addf %13, %12 : vector<2x128xf32>
    %15 = arith.divf %13, %14 : vector<2x128xf32>
    %16 = vector.extract_strided_slice %15 {offsets = [0, 0], sizes = [2, 32], strides = [1, 1]} : vector<2x128xf32> to vector<2x32xf32>
    %17 = vector.extract_strided_slice %15 {offsets = [0, 32], sizes = [2, 32], strides = [1, 1]} : vector<2x128xf32> to vector<2x32xf32>
    %18 = vector.extract_strided_slice %15 {offsets = [0, 64], sizes = [2, 32], strides = [1, 1]} : vector<2x128xf32> to vector<2x32xf32>
    %19 = vector.extract_strided_slice %15 {offsets = [0, 96], sizes = [2, 32], strides = [1, 1]} : vector<2x128xf32> to vector<2x32xf32>
    %cst_17 = arith.constant 2.000000e+00 : f32
    %20 = vector.broadcast %cst_17 : f32 to vector<2x32xf32>
    %21 = arith.mulf %20, %19 : vector<2x32xf32>
    %cst_18 = arith.constant 1.000000e+00 : f32
    %22 = vector.broadcast %cst_18 : f32 to vector<2x32xf32>
    %23 = arith.subf %21, %22 : vector<2x32xf32>
    %24 = arith.mulf %17, %8 : vector<2x32xf32>
    %25 = arith.mulf %16, %23 : vector<2x32xf32>
    %26 = arith.addf %24, %25 : vector<2x32xf32>
    %27 = math.tanh %26 : vector<2x32xf32>
    %28 = arith.mulf %18, %27 : vector<2x32xf32>
    %cst_19 = arith.constant dense<0.000000e+00> : vector<2x128xf32>
    %29 = tpu.matmul %28, %4, %cst_19 {dimension_numbers = #tpu.dot_dimension_numbers<[1], [0], [0], [1], [0, 0, 1, 1], [], []>} : vector<2x32xf32>, vector<32x128xf32>, vector<2x128xf32> -> vector<2x128xf32>
    %30 = vector.broadcast %5 : vector<1x128xf32> to vector<2x128xf32>
    %31 = arith.addf %29, %30 : vector<2x128xf32>
    %32 = arith.negf %31 : vector<2x128xf32>
    %33 = math.exp %32 : vector<2x128xf32>
    %cst_20 = arith.constant 1.000000e+00 : f32
    %34 = vector.broadcast %cst_20 : f32 to vector<2x128xf32>
    %35 = arith.addf %34, %33 : vector<2x128xf32>
    %36 = arith.divf %34, %35 : vector<2x128xf32>
    %37 = vector.extract_strided_slice %36 {offsets = [0, 0], sizes = [2, 32], strides = [1, 1]} : vector<2x128xf32> to vector<2x32xf32>
    %38 = vector.extract_strided_slice %36 {offsets = [0, 32], sizes = [2, 32], strides = [1, 1]} : vector<2x128xf32> to vector<2x32xf32>
    %39 = vector.extract_strided_slice %36 {offsets = [0, 64], sizes = [2, 32], strides = [1, 1]} : vector<2x128xf32> to vector<2x32xf32>
    %40 = vector.extract_strided_slice %36 {offsets = [0, 96], sizes = [2, 32], strides = [1, 1]} : vector<2x128xf32> to vector<2x32xf32>
    %cst_21 = arith.constant 2.000000e+00 : f32
    %41 = vector.broadcast %cst_21 : f32 to vector<2x32xf32>
    %42 = arith.mulf %41, %40 : vector<2x32xf32>
    %cst_22 = arith.constant 1.000000e+00 : f32
    %43 = vector.broadcast %cst_22 : f32 to vector<2x32xf32>
    %44 = arith.subf %42, %43 : vector<2x32xf32>
    %45 = arith.mulf %38, %9 : vector<2x32xf32>
    %46 = arith.mulf %37, %44 : vector<2x32xf32>
    %47 = arith.addf %45, %46 : vector<2x32xf32>
    %48 = math.tanh %47 : vector<2x32xf32>
    %49 = arith.mulf %39, %48 : vector<2x32xf32>
    %cst_23 = arith.constant dense<0.000000e+00> : vector<2x128xf32>
    %50 = tpu.matmul %28, %3, %cst_23 {dimension_numbers = #tpu.dot_dimension_numbers<[1], [0], [0], [1], [0, 0, 1, 1], [], []>} : vector<2x32xf32>, vector<32x128xf32>, vector<2x128xf32> -> vector<2x128xf32>
    %cst_24 = arith.constant dense<0.000000e+00> : vector<2x128xf32>
    %51 = tpu.matmul %49, %6, %cst_24 {dimension_numbers = #tpu.dot_dimension_numbers<[1], [0], [0], [1], [0, 0, 1, 1], [], []>} : vector<2x32xf32>, vector<32x128xf32>, vector<2x128xf32> -> vector<2x128xf32>
    %cst_25 = arith.constant dense<0.000000e+00> : vector<2x6xf32>
    %52 = tpu.matmul %49, %7, %cst_25 {dimension_numbers = #tpu.dot_dimension_numbers<[1], [0], [0], [1], [0, 0, 1, 1], [], []>} : vector<2x32xf32>, vector<32x6xf32>, vector<2x6xf32> -> vector<2x6xf32>
    %53 = math.tanh %52 : vector<2x6xf32>
    %cst_26 = arith.constant 1.500000e+00 : f32
    %54 = vector.broadcast %cst_26 : f32 to vector<2x6xf32>
    %55 = arith.mulf %54, %53 : vector<2x6xf32>
    %cst_27 = arith.constant dense<0xFF800000> : vector<2xf32>
    %56 = vector.multi_reduction <maximumf>, %55, %cst_27 [1] : vector<2x6xf32> to vector<2xf32>
    %57 = vector.shape_cast %56 : vector<2xf32> to vector<2x1xf32>
    %58 = vector.broadcast %57 : vector<2x1xf32> to vector<2x6xf32>
    %59 = arith.cmpf oeq, %55, %58 : vector<2x6xf32>
    %c6_i32 = arith.constant 6 : i32
    %60 = vector.broadcast %c6_i32 : i32 to vector<2x6xi32>
    %61 = arith.select %59, %10, %60 : vector<2x6xi1>, vector<2x6xi32>
    %cst_28 = arith.constant dense<2147483647> : vector<2xi32>
    %62 = vector.multi_reduction <minsi>, %61, %cst_28 [1] : vector<2x6xi32> to vector<2xi32>
    %63 = vector.shape_cast %62 : vector<2xi32> to vector<2x1xi32>
    %64 = vector.broadcast %63 : vector<2x1xi32> to vector<2x6xi32>
    %65 = arith.cmpi eq, %10, %64 : vector<2x6xi32>
    %66 = arith.extui %65 : vector<2x6xi1> to vector<2x6xi32>
    %67 = arith.sitofp %66 : vector<2x6xi32> to vector<2x6xf32>
    %68 = vector.broadcast %57 : vector<2x1xf32> to vector<2x6xf32>
    %69 = arith.subf %55, %68 : vector<2x6xf32>
    %70 = math.exp %69 : vector<2x6xf32>
    %cst_29 = arith.constant dense<0.000000e+00> : vector<2xf32>
    %71 = vector.multi_reduction <add>, %70, %cst_29 [1] : vector<2x6xf32> to vector<2xf32>
    %72 = vector.shape_cast %71 : vector<2xf32> to vector<2x1xf32>
    %73 = arith.mulf %70, %55 : vector<2x6xf32>
    %cst_30 = arith.constant dense<0.000000e+00> : vector<2xf32>
    %74 = vector.multi_reduction <add>, %73, %cst_30 [1] : vector<2x6xf32> to vector<2xf32>
    %75 = vector.shape_cast %74 : vector<2xf32> to vector<2x1xf32>
    %76 = math.log %72 : vector<2x1xf32>
    %77 = arith.addf %57, %76 : vector<2x1xf32>
    %78 = arith.subf %57, %77 : vector<2x1xf32>
    %79 = arith.divf %75, %72 : vector<2x1xf32>
    %80 = arith.subf %77, %79 : vector<2x1xf32>
    %cst_31 = arith.constant dense<0.000000e+00> : vector<2x128xf32>
    %81 = tpu.matmul %67, %2, %cst_31 {dimension_numbers = #tpu.dot_dimension_numbers<[1], [0], [0], [1], [0, 0, 1, 1], [], []>} : vector<2x6xf32>, vector<6x128xf32>, vector<2x128xf32> -> vector<2x128xf32>
    %82 = arith.addf %81, %1 : vector<2x128xf32>
    %83 = arith.addf %82, %50 : vector<2x128xf32>
    %84 = arith.negf %83 : vector<2x128xf32>
    %85 = math.exp %84 : vector<2x128xf32>
    %cst_32 = arith.constant 1.000000e+00 : f32
    %86 = vector.broadcast %cst_32 : f32 to vector<2x128xf32>
    %87 = arith.addf %86, %85 : vector<2x128xf32>
    %88 = arith.divf %86, %87 : vector<2x128xf32>
    %89 = vector.extract_strided_slice %88 {offsets = [0, 0], sizes = [2, 32], strides = [1, 1]} : vector<2x128xf32> to vector<2x32xf32>
    %90 = vector.extract_strided_slice %88 {offsets = [0, 32], sizes = [2, 32], strides = [1, 1]} : vector<2x128xf32> to vector<2x32xf32>
    %91 = vector.extract_strided_slice %88 {offsets = [0, 64], sizes = [2, 32], strides = [1, 1]} : vector<2x128xf32> to vector<2x32xf32>
    %92 = vector.extract_strided_slice %88 {offsets = [0, 96], sizes = [2, 32], strides = [1, 1]} : vector<2x128xf32> to vector<2x32xf32>
    %cst_33 = arith.constant 2.000000e+00 : f32
    %93 = vector.broadcast %cst_33 : f32 to vector<2x32xf32>
    %94 = arith.mulf %93, %92 : vector<2x32xf32>
    %cst_34 = arith.constant 1.000000e+00 : f32
    %95 = vector.broadcast %cst_34 : f32 to vector<2x32xf32>
    %96 = arith.subf %94, %95 : vector<2x32xf32>
    %97 = arith.mulf %90, %26 : vector<2x32xf32>
    %98 = arith.mulf %89, %96 : vector<2x32xf32>
    %99 = arith.addf %97, %98 : vector<2x32xf32>
    %100 = math.tanh %99 : vector<2x32xf32>
    %101 = arith.mulf %91, %100 : vector<2x32xf32>
    %cst_35 = arith.constant dense<0.000000e+00> : vector<2x128xf32>
    %102 = tpu.matmul %101, %4, %cst_35 {dimension_numbers = #tpu.dot_dimension_numbers<[1], [0], [0], [1], [0, 0, 1, 1], [], []>} : vector<2x32xf32>, vector<32x128xf32>, vector<2x128xf32> -> vector<2x128xf32>
    %103 = vector.broadcast %5 : vector<1x128xf32> to vector<2x128xf32>
    %104 = arith.addf %102, %103 : vector<2x128xf32>
    %105 = arith.addf %104, %51 : vector<2x128xf32>
    %106 = arith.negf %105 : vector<2x128xf32>
    %107 = math.exp %106 : vector<2x128xf32>
    %cst_36 = arith.constant 1.000000e+00 : f32
    %108 = vector.broadcast %cst_36 : f32 to vector<2x128xf32>
    %109 = arith.addf %108, %107 : vector<2x128xf32>
    %110 = arith.divf %108, %109 : vector<2x128xf32>
    %111 = vector.extract_strided_slice %110 {offsets = [0, 0], sizes = [2, 32], strides = [1, 1]} : vector<2x128xf32> to vector<2x32xf32>
    %112 = vector.extract_strided_slice %110 {offsets = [0, 32], sizes = [2, 32], strides = [1, 1]} : vector<2x128xf32> to vector<2x32xf32>
    %113 = vector.extract_strided_slice %110 {offsets = [0, 64], sizes = [2, 32], strides = [1, 1]} : vector<2x128xf32> to vector<2x32xf32>
    %114 = vector.extract_strided_slice %110 {offsets = [0, 96], sizes = [2, 32], strides = [1, 1]} : vector<2x128xf32> to vector<2x32xf32>
    %cst_37 = arith.constant 2.000000e+00 : f32
    %115 = vector.broadcast %cst_37 : f32 to vector<2x32xf32>
    %116 = arith.mulf %115, %114 : vector<2x32xf32>
    %cst_38 = arith.constant 1.000000e+00 : f32
    %117 = vector.broadcast %cst_38 : f32 to vector<2x32xf32>
    %118 = arith.subf %116, %117 : vector<2x32xf32>
    %119 = arith.mulf %112, %47 : vector<2x32xf32>
    %120 = arith.mulf %111, %118 : vector<2x32xf32>
    %121 = arith.addf %119, %120 : vector<2x32xf32>
    %122 = math.tanh %121 : vector<2x32xf32>
    %123 = arith.mulf %113, %122 : vector<2x32xf32>
    %cst_39 = arith.constant dense<0.000000e+00> : vector<2x128xf32>
    %124 = tpu.matmul %101, %3, %cst_39 {dimension_numbers = #tpu.dot_dimension_numbers<[1], [0], [0], [1], [0, 0, 1, 1], [], []>} : vector<2x32xf32>, vector<32x128xf32>, vector<2x128xf32> -> vector<2x128xf32>
    %cst_40 = arith.constant dense<0.000000e+00> : vector<2x128xf32>
    %125 = tpu.matmul %123, %6, %cst_40 {dimension_numbers = #tpu.dot_dimension_numbers<[1], [0], [0], [1], [0, 0, 1, 1], [], []>} : vector<2x32xf32>, vector<32x128xf32>, vector<2x128xf32> -> vector<2x128xf32>
    %cst_41 = arith.constant dense<0.000000e+00> : vector<2x6xf32>
    %126 = tpu.matmul %123, %7, %cst_41 {dimension_numbers = #tpu.dot_dimension_numbers<[1], [0], [0], [1], [0, 0, 1, 1], [], []>} : vector<2x32xf32>, vector<32x6xf32>, vector<2x6xf32> -> vector<2x6xf32>
    %127 = math.tanh %126 : vector<2x6xf32>
    %cst_42 = arith.constant 1.500000e+00 : f32
    %128 = vector.broadcast %cst_42 : f32 to vector<2x6xf32>
    %129 = arith.mulf %128, %127 : vector<2x6xf32>
    %cst_43 = arith.constant dense<0xFF800000> : vector<2xf32>
    %130 = vector.multi_reduction <maximumf>, %129, %cst_43 [1] : vector<2x6xf32> to vector<2xf32>
    %131 = vector.shape_cast %130 : vector<2xf32> to vector<2x1xf32>
    %132 = vector.broadcast %131 : vector<2x1xf32> to vector<2x6xf32>
    %133 = arith.cmpf oeq, %129, %132 : vector<2x6xf32>
    %c6_i32_44 = arith.constant 6 : i32
    %134 = vector.broadcast %c6_i32_44 : i32 to vector<2x6xi32>
    %135 = arith.select %133, %10, %134 : vector<2x6xi1>, vector<2x6xi32>
    %cst_45 = arith.constant dense<2147483647> : vector<2xi32>
    %136 = vector.multi_reduction <minsi>, %135, %cst_45 [1] : vector<2x6xi32> to vector<2xi32>
    %137 = vector.shape_cast %136 : vector<2xi32> to vector<2x1xi32>
    %138 = vector.broadcast %137 : vector<2x1xi32> to vector<2x6xi32>
    %139 = arith.cmpi eq, %10, %138 : vector<2x6xi32>
    %140 = arith.extui %139 : vector<2x6xi1> to vector<2x6xi32>
    %141 = arith.sitofp %140 : vector<2x6xi32> to vector<2x6xf32>
    %142 = vector.broadcast %131 : vector<2x1xf32> to vector<2x6xf32>
    %143 = arith.subf %129, %142 : vector<2x6xf32>
    %144 = math.exp %143 : vector<2x6xf32>
    %cst_46 = arith.constant dense<0.000000e+00> : vector<2xf32>
    %145 = vector.multi_reduction <add>, %144, %cst_46 [1] : vector<2x6xf32> to vector<2xf32>
    %146 = vector.shape_cast %145 : vector<2xf32> to vector<2x1xf32>
    %147 = arith.mulf %144, %129 : vector<2x6xf32>
    %cst_47 = arith.constant dense<0.000000e+00> : vector<2xf32>
    %148 = vector.multi_reduction <add>, %147, %cst_47 [1] : vector<2x6xf32> to vector<2xf32>
    %149 = vector.shape_cast %148 : vector<2xf32> to vector<2x1xf32>
    %150 = math.log %146 : vector<2x1xf32>
    %151 = arith.addf %131, %150 : vector<2x1xf32>
    %152 = arith.subf %131, %151 : vector<2x1xf32>
    %153 = arith.divf %149, %146 : vector<2x1xf32>
    %154 = arith.subf %151, %153 : vector<2x1xf32>
    %cst_48 = arith.constant dense<0.000000e+00> : vector<2x128xf32>
    %155 = tpu.matmul %141, %2, %cst_48 {dimension_numbers = #tpu.dot_dimension_numbers<[1], [0], [0], [1], [0, 0, 1, 1], [], []>} : vector<2x6xf32>, vector<6x128xf32>, vector<2x128xf32> -> vector<2x128xf32>
    %156 = arith.addf %155, %1 : vector<2x128xf32>
    %157 = arith.addf %156, %124 : vector<2x128xf32>
    %158 = arith.negf %157 : vector<2x128xf32>
    %159 = math.exp %158 : vector<2x128xf32>
    %cst_49 = arith.constant 1.000000e+00 : f32
    %160 = vector.broadcast %cst_49 : f32 to vector<2x128xf32>
    %161 = arith.addf %160, %159 : vector<2x128xf32>
    %162 = arith.divf %160, %161 : vector<2x128xf32>
    %163 = vector.extract_strided_slice %162 {offsets = [0, 0], sizes = [2, 32], strides = [1, 1]} : vector<2x128xf32> to vector<2x32xf32>
    %164 = vector.extract_strided_slice %162 {offsets = [0, 32], sizes = [2, 32], strides = [1, 1]} : vector<2x128xf32> to vector<2x32xf32>
    %165 = vector.extract_strided_slice %162 {offsets = [0, 64], sizes = [2, 32], strides = [1, 1]} : vector<2x128xf32> to vector<2x32xf32>
    %166 = vector.extract_strided_slice %162 {offsets = [0, 96], sizes = [2, 32], strides = [1, 1]} : vector<2x128xf32> to vector<2x32xf32>
    %cst_50 = arith.constant 2.000000e+00 : f32
    %167 = vector.broadcast %cst_50 : f32 to vector<2x32xf32>
    %168 = arith.mulf %167, %166 : vector<2x32xf32>
    %cst_51 = arith.constant 1.000000e+00 : f32
    %169 = vector.broadcast %cst_51 : f32 to vector<2x32xf32>
    %170 = arith.subf %168, %169 : vector<2x32xf32>
    %171 = arith.mulf %164, %99 : vector<2x32xf32>
    %172 = arith.mulf %163, %170 : vector<2x32xf32>
    %173 = arith.addf %171, %172 : vector<2x32xf32>
    %174 = math.tanh %173 : vector<2x32xf32>
    %175 = arith.mulf %165, %174 : vector<2x32xf32>
    %cst_52 = arith.constant dense<0.000000e+00> : vector<2x128xf32>
    %176 = tpu.matmul %175, %4, %cst_52 {dimension_numbers = #tpu.dot_dimension_numbers<[1], [0], [0], [1], [0, 0, 1, 1], [], []>} : vector<2x32xf32>, vector<32x128xf32>, vector<2x128xf32> -> vector<2x128xf32>
    %177 = vector.broadcast %5 : vector<1x128xf32> to vector<2x128xf32>
    %178 = arith.addf %176, %177 : vector<2x128xf32>
    %179 = arith.addf %178, %125 : vector<2x128xf32>
    %180 = arith.negf %179 : vector<2x128xf32>
    %181 = math.exp %180 : vector<2x128xf32>
    %cst_53 = arith.constant 1.000000e+00 : f32
    %182 = vector.broadcast %cst_53 : f32 to vector<2x128xf32>
    %183 = arith.addf %182, %181 : vector<2x128xf32>
    %184 = arith.divf %182, %183 : vector<2x128xf32>
    %185 = vector.extract_strided_slice %184 {offsets = [0, 0], sizes = [2, 32], strides = [1, 1]} : vector<2x128xf32> to vector<2x32xf32>
    %186 = vector.extract_strided_slice %184 {offsets = [0, 32], sizes = [2, 32], strides = [1, 1]} : vector<2x128xf32> to vector<2x32xf32>
    %187 = vector.extract_strided_slice %184 {offsets = [0, 64], sizes = [2, 32], strides = [1, 1]} : vector<2x128xf32> to vector<2x32xf32>
    %188 = vector.extract_strided_slice %184 {offsets = [0, 96], sizes = [2, 32], strides = [1, 1]} : vector<2x128xf32> to vector<2x32xf32>
    %cst_54 = arith.constant 2.000000e+00 : f32
    %189 = vector.broadcast %cst_54 : f32 to vector<2x32xf32>
    %190 = arith.mulf %189, %188 : vector<2x32xf32>
    %cst_55 = arith.constant 1.000000e+00 : f32
    %191 = vector.broadcast %cst_55 : f32 to vector<2x32xf32>
    %192 = arith.subf %190, %191 : vector<2x32xf32>
    %193 = arith.mulf %186, %121 : vector<2x32xf32>
    %194 = arith.mulf %185, %192 : vector<2x32xf32>
    %195 = arith.addf %193, %194 : vector<2x32xf32>
    %196 = math.tanh %195 : vector<2x32xf32>
    %197 = arith.mulf %187, %196 : vector<2x32xf32>
    %cst_56 = arith.constant dense<0.000000e+00> : vector<2x128xf32>
    %198 = tpu.matmul %175, %3, %cst_56 {dimension_numbers = #tpu.dot_dimension_numbers<[1], [0], [0], [1], [0, 0, 1, 1], [], []>} : vector<2x32xf32>, vector<32x128xf32>, vector<2x128xf32> -> vector<2x128xf32>
    %cst_57 = arith.constant dense<0.000000e+00> : vector<2x128xf32>
    %199 = tpu.matmul %197, %6, %cst_57 {dimension_numbers = #tpu.dot_dimension_numbers<[1], [0], [0], [1], [0, 0, 1, 1], [], []>} : vector<2x32xf32>, vector<32x128xf32>, vector<2x128xf32> -> vector<2x128xf32>
    %cst_58 = arith.constant dense<0.000000e+00> : vector<2x6xf32>
    %200 = tpu.matmul %197, %7, %cst_58 {dimension_numbers = #tpu.dot_dimension_numbers<[1], [0], [0], [1], [0, 0, 1, 1], [], []>} : vector<2x32xf32>, vector<32x6xf32>, vector<2x6xf32> -> vector<2x6xf32>
    %201 = math.tanh %200 : vector<2x6xf32>
    %cst_59 = arith.constant 1.500000e+00 : f32
    %202 = vector.broadcast %cst_59 : f32 to vector<2x6xf32>
    %203 = arith.mulf %202, %201 : vector<2x6xf32>
    %cst_60 = arith.constant dense<0xFF800000> : vector<2xf32>
    %204 = vector.multi_reduction <maximumf>, %203, %cst_60 [1] : vector<2x6xf32> to vector<2xf32>
    %205 = vector.shape_cast %204 : vector<2xf32> to vector<2x1xf32>
    %206 = vector.broadcast %205 : vector<2x1xf32> to vector<2x6xf32>
    %207 = arith.cmpf oeq, %203, %206 : vector<2x6xf32>
    %c6_i32_61 = arith.constant 6 : i32
    %208 = vector.broadcast %c6_i32_61 : i32 to vector<2x6xi32>
    %209 = arith.select %207, %10, %208 : vector<2x6xi1>, vector<2x6xi32>
    %cst_62 = arith.constant dense<2147483647> : vector<2xi32>
    %210 = vector.multi_reduction <minsi>, %209, %cst_62 [1] : vector<2x6xi32> to vector<2xi32>
    %211 = vector.shape_cast %210 : vector<2xi32> to vector<2x1xi32>
    %212 = vector.broadcast %211 : vector<2x1xi32> to vector<2x6xi32>
    %213 = arith.cmpi eq, %10, %212 : vector<2x6xi32>
    %214 = arith.extui %213 : vector<2x6xi1> to vector<2x6xi32>
    %215 = arith.sitofp %214 : vector<2x6xi32> to vector<2x6xf32>
    %216 = vector.broadcast %205 : vector<2x1xf32> to vector<2x6xf32>
    %217 = arith.subf %203, %216 : vector<2x6xf32>
    %218 = math.exp %217 : vector<2x6xf32>
    %cst_63 = arith.constant dense<0.000000e+00> : vector<2xf32>
    %219 = vector.multi_reduction <add>, %218, %cst_63 [1] : vector<2x6xf32> to vector<2xf32>
    %220 = vector.shape_cast %219 : vector<2xf32> to vector<2x1xf32>
    %221 = arith.mulf %218, %203 : vector<2x6xf32>
    %cst_64 = arith.constant dense<0.000000e+00> : vector<2xf32>
    %222 = vector.multi_reduction <add>, %221, %cst_64 [1] : vector<2x6xf32> to vector<2xf32>
    %223 = vector.shape_cast %222 : vector<2xf32> to vector<2x1xf32>
    %224 = math.log %220 : vector<2x1xf32>
    %225 = arith.addf %205, %224 : vector<2x1xf32>
    %226 = arith.subf %205, %225 : vector<2x1xf32>
    %227 = arith.divf %223, %220 : vector<2x1xf32>
    %228 = arith.subf %225, %227 : vector<2x1xf32>
    %cst_65 = arith.constant dense<0.000000e+00> : vector<2x128xf32>
    %229 = tpu.matmul %215, %2, %cst_65 {dimension_numbers = #tpu.dot_dimension_numbers<[1], [0], [0], [1], [0, 0, 1, 1], [], []>} : vector<2x6xf32>, vector<6x128xf32>, vector<2x128xf32> -> vector<2x128xf32>
    %230 = arith.addf %229, %1 : vector<2x128xf32>
    %231 = arith.addf %230, %198 : vector<2x128xf32>
    %232 = arith.negf %231 : vector<2x128xf32>
    %233 = math.exp %232 : vector<2x128xf32>
    %cst_66 = arith.constant 1.000000e+00 : f32
    %234 = vector.broadcast %cst_66 : f32 to vector<2x128xf32>
    %235 = arith.addf %234, %233 : vector<2x128xf32>
    %236 = arith.divf %234, %235 : vector<2x128xf32>
    %237 = vector.extract_strided_slice %236 {offsets = [0, 0], sizes = [2, 32], strides = [1, 1]} : vector<2x128xf32> to vector<2x32xf32>
    %238 = vector.extract_strided_slice %236 {offsets = [0, 32], sizes = [2, 32], strides = [1, 1]} : vector<2x128xf32> to vector<2x32xf32>
    %239 = vector.extract_strided_slice %236 {offsets = [0, 64], sizes = [2, 32], strides = [1, 1]} : vector<2x128xf32> to vector<2x32xf32>
    %240 = vector.extract_strided_slice %236 {offsets = [0, 96], sizes = [2, 32], strides = [1, 1]} : vector<2x128xf32> to vector<2x32xf32>
    %cst_67 = arith.constant 2.000000e+00 : f32
    %241 = vector.broadcast %cst_67 : f32 to vector<2x32xf32>
    %242 = arith.mulf %241, %240 : vector<2x32xf32>
    %cst_68 = arith.constant 1.000000e+00 : f32
    %243 = vector.broadcast %cst_68 : f32 to vector<2x32xf32>
    %244 = arith.subf %242, %243 : vector<2x32xf32>
    %245 = arith.mulf %238, %173 : vector<2x32xf32>
    %246 = arith.mulf %237, %244 : vector<2x32xf32>
    %247 = arith.addf %245, %246 : vector<2x32xf32>
    %248 = math.tanh %247 : vector<2x32xf32>
    %249 = arith.mulf %239, %248 : vector<2x32xf32>
    %cst_69 = arith.constant dense<0.000000e+00> : vector<2x128xf32>
    %250 = tpu.matmul %249, %4, %cst_69 {dimension_numbers = #tpu.dot_dimension_numbers<[1], [0], [0], [1], [0, 0, 1, 1], [], []>} : vector<2x32xf32>, vector<32x128xf32>, vector<2x128xf32> -> vector<2x128xf32>
    %251 = vector.broadcast %5 : vector<1x128xf32> to vector<2x128xf32>
    %252 = arith.addf %250, %251 : vector<2x128xf32>
    %253 = arith.addf %252, %199 : vector<2x128xf32>
    %254 = arith.negf %253 : vector<2x128xf32>
    %255 = math.exp %254 : vector<2x128xf32>
    %cst_70 = arith.constant 1.000000e+00 : f32
    %256 = vector.broadcast %cst_70 : f32 to vector<2x128xf32>
    %257 = arith.addf %256, %255 : vector<2x128xf32>
    %258 = arith.divf %256, %257 : vector<2x128xf32>
    %259 = vector.extract_strided_slice %258 {offsets = [0, 0], sizes = [2, 32], strides = [1, 1]} : vector<2x128xf32> to vector<2x32xf32>
    %260 = vector.extract_strided_slice %258 {offsets = [0, 32], sizes = [2, 32], strides = [1, 1]} : vector<2x128xf32> to vector<2x32xf32>
    %261 = vector.extract_strided_slice %258 {offsets = [0, 64], sizes = [2, 32], strides = [1, 1]} : vector<2x128xf32> to vector<2x32xf32>
    %262 = vector.extract_strided_slice %258 {offsets = [0, 96], sizes = [2, 32], strides = [1, 1]} : vector<2x128xf32> to vector<2x32xf32>
    %cst_71 = arith.constant 2.000000e+00 : f32
    %263 = vector.broadcast %cst_71 : f32 to vector<2x32xf32>
    %264 = arith.mulf %263, %262 : vector<2x32xf32>
    %cst_72 = arith.constant 1.000000e+00 : f32
    %265 = vector.broadcast %cst_72 : f32 to vector<2x32xf32>
    %266 = arith.subf %264, %265 : vector<2x32xf32>
    %267 = arith.mulf %260, %195 : vector<2x32xf32>
    %268 = arith.mulf %259, %266 : vector<2x32xf32>
    %269 = arith.addf %267, %268 : vector<2x32xf32>
    %270 = math.tanh %269 : vector<2x32xf32>
    %271 = arith.mulf %261, %270 : vector<2x32xf32>
    %cst_73 = arith.constant dense<0.000000e+00> : vector<2x6xf32>
    %272 = tpu.matmul %271, %7, %cst_73 {dimension_numbers = #tpu.dot_dimension_numbers<[1], [0], [0], [1], [0, 0, 1, 1], [], []>} : vector<2x32xf32>, vector<32x6xf32>, vector<2x6xf32> -> vector<2x6xf32>
    %273 = math.tanh %272 : vector<2x6xf32>
    %cst_74 = arith.constant 1.500000e+00 : f32
    %274 = vector.broadcast %cst_74 : f32 to vector<2x6xf32>
    %275 = arith.mulf %274, %273 : vector<2x6xf32>
    %cst_75 = arith.constant dense<0xFF800000> : vector<2xf32>
    %276 = vector.multi_reduction <maximumf>, %275, %cst_75 [1] : vector<2x6xf32> to vector<2xf32>
    %277 = vector.shape_cast %276 : vector<2xf32> to vector<2x1xf32>
    %278 = vector.broadcast %277 : vector<2x1xf32> to vector<2x6xf32>
    %279 = arith.cmpf oeq, %275, %278 : vector<2x6xf32>
    %c6_i32_76 = arith.constant 6 : i32
    %280 = vector.broadcast %c6_i32_76 : i32 to vector<2x6xi32>
    %281 = arith.select %279, %10, %280 : vector<2x6xi1>, vector<2x6xi32>
    %cst_77 = arith.constant dense<2147483647> : vector<2xi32>
    %282 = vector.multi_reduction <minsi>, %281, %cst_77 [1] : vector<2x6xi32> to vector<2xi32>
    %283 = vector.shape_cast %282 : vector<2xi32> to vector<2x1xi32>
    %284 = vector.broadcast %277 : vector<2x1xf32> to vector<2x6xf32>
    %285 = arith.subf %275, %284 : vector<2x6xf32>
    %286 = math.exp %285 : vector<2x6xf32>
    %cst_78 = arith.constant dense<0.000000e+00> : vector<2xf32>
    %287 = vector.multi_reduction <add>, %286, %cst_78 [1] : vector<2x6xf32> to vector<2xf32>
    %288 = vector.shape_cast %287 : vector<2xf32> to vector<2x1xf32>
    %289 = arith.mulf %286, %275 : vector<2x6xf32>
    %cst_79 = arith.constant dense<0.000000e+00> : vector<2xf32>
    %290 = vector.multi_reduction <add>, %289, %cst_79 [1] : vector<2x6xf32> to vector<2xf32>
    %291 = vector.shape_cast %290 : vector<2xf32> to vector<2x1xf32>
    %292 = math.log %288 : vector<2x1xf32>
    %293 = arith.addf %277, %292 : vector<2x1xf32>
    %294 = arith.subf %277, %293 : vector<2x1xf32>
    %295 = arith.divf %291, %288 : vector<2x1xf32>
    %296 = arith.subf %293, %295 : vector<2x1xf32>
    %297 = tpu.concatenate %63, %137, %211, %283 in 1 : vector<2x1xi32>, vector<2x1xi32>, vector<2x1xi32>, vector<2x1xi32> -> vector<2x4xi32>
    %c0_80 = arith.constant 0 : index
    %c0_81 = arith.constant 0 : index
    %298 = vector.load %arg9[%c0_80, %c0_81] : memref<2x4xi32, #tpu.memory_space<vmem>>, vector<2x4xi32>
    tpu.vector_store %arg9[%c0_80, %c0_81], %297 {strides = array<i32>} : memref<2x4xi32, #tpu.memory_space<vmem>>, vector<2x4xi32>,
    %299 = tpu.concatenate %78, %152, %226, %294 in 1 : vector<2x1xf32>, vector<2x1xf32>, vector<2x1xf32>, vector<2x1xf32> -> vector<2x4xf32>
    %c0_82 = arith.constant 0 : index
    %c0_83 = arith.constant 0 : index
    %300 = vector.load %arg10[%c0_82, %c0_83] : memref<2x4xf32, #tpu.memory_space<vmem>>, vector<2x4xf32>
    tpu.vector_store %arg10[%c0_82, %c0_83], %299 {strides = array<i32>} : memref<2x4xf32, #tpu.memory_space<vmem>>, vector<2x4xf32>,
    %301 = tpu.concatenate %80, %154, %228, %296 in 1 : vector<2x1xf32>, vector<2x1xf32>, vector<2x1xf32>, vector<2x1xf32> -> vector<2x4xf32>
    %c0_84 = arith.constant 0 : index
    %c0_85 = arith.constant 0 : index
    %302 = vector.load %arg11[%c0_84, %c0_85] : memref<2x4xf32, #tpu.memory_space<vmem>>, vector<2x4xf32>
    tpu.vector_store %arg11[%c0_84, %c0_85], %301 {strides = array<i32>} : memref<2x4xf32, #tpu.memory_space<vmem>>, vector<2x4xf32>,
    return
  }
  func.func @transform_0(%arg0: i32) -> (i32, i32) {
    %c0_i32 = arith.constant 0 : i32
    %c0_i32_0 = arith.constant 0 : i32
    %c0_i32_1 = arith.constant 0 : i32
    return %c0_i32, %c0_i32_0 : i32, i32
  }
  func.func @transform_1(%arg0: i32) -> (i32, i32) {
    %c0_i32 = arith.constant 0 : i32
    %c0_i32_0 = arith.constant 0 : i32
    %c0_i32_1 = arith.constant 0 : i32
    return %c0_i32, %c0_i32_0 : i32, i32
  }
  func.func @transform_2(%arg0: i32) -> (i32, i32) {
    %c0_i32 = arith.constant 0 : i32
    %c0_i32_0 = arith.constant 0 : i32
    %c0_i32_1 = arith.constant 0 : i32
    return %c0_i32, %c0_i32_0 : i32, i32
  }
  func.func @transform_3(%arg0: i32) -> (i32, i32) {
    %c0_i32 = arith.constant 0 : i32
    %c0_i32_0 = arith.constant 0 : i32
    %c0_i32_1 = arith.constant 0 : i32
    return %c0_i32, %c0_i32_0 : i32, i32
  }
  func.func @transform_4(%arg0: i32) -> (i32, i32) {
    %c0_i32 = arith.constant 0 : i32
    %c0_i32_0 = arith.constant 0 : i32
    %c0_i32_1 = arith.constant 0 : i32
    return %c0_i32, %c0_i32_0 : i32, i32
  }
  func.func @transform_5(%arg0: i32) -> (i32, i32) {
    %c0_i32 = arith.constant 0 : i32
    %c0_i32_0 = arith.constant 0 : i32
    %c0_i32_1 = arith.constant 0 : i32
    return %c0_i32, %c0_i32_0 : i32, i32
  }
  func.func @transform_6(%arg0: i32) -> (i32, i32) {
    %c0_i32 = arith.constant 0 : i32
    %c0_i32_0 = arith.constant 0 : i32
    %c0_i32_1 = arith.constant 0 : i32
    return %c0_i32, %c0_i32_0 : i32, i32
  }
  func.func @transform_7(%arg0: i32) -> (i32, i32) {
    %c0_i32 = arith.constant 0 : i32
    %c0_i32_0 = arith.constant 0 : i32
    %c0_i32_1 = arith.constant 0 : i32
    return %c0_i32, %c0_i32_0 : i32, i32
  }
  func.func @transform_8(%arg0: i32) -> (i32, i32) {
    %c0_i32 = arith.constant 0 : i32
    %c0_i32_0 = arith.constant 0 : i32
    %c0_i32_1 = arith.constant 0 : i32
    return %c0_i32, %c0_i32_0 : i32, i32
  }
  func.func @transform_9(%arg0: i32) -> (i32, i32) {
    %c0_i32 = arith.constant 0 : i32
    %c0_i32_0 = arith.constant 0 : i32
    %c0_i32_1 = arith.constant 0 : i32
    return %c0_i32, %c0_i32_0 : i32, i32
  }
  func.func @transform_10(%arg0: i32) -> (i32, i32) {
    %c0_i32 = arith.constant 0 : i32
    %c0_i32_0 = arith.constant 0 : i32
    %c0_i32_1 = arith.constant 0 : i32
    return %c0_i32, %c0_i32_0 : i32, i32
  }
}

</mosaic_0001>

<bundles_post_ra>
// kernel: tpu_custom_call.1
= control target key start
LH: loop header
LB: loop body
LE: loop exit
PB: predicated region body
PF: predicated region fallthrough
CT: control target
= control target key end

     0   :  { %16 = vsyncpa [#allocation3], 0  ;;  %s1822_s0 = inlined_call_operand.vmem [shape: f32[2,128], index: 0, kind: input, shape index: {}]   ;;  %s1823_s1 = inlined_call_operand.hbm [shape: f32[2,128], index: 1, kind: input, shape index: {}]   ;;  %s1824_s2 = inlined_call_operand.vmem [shape: f32[6,128], index: 2, kind: input, shape index: {}]   ;;  %s1825_s3 = inlined_call_operand.vmem [shape: f32[32,128], index: 3, kind: input, shape index: {}]   ;;  %s1826_s4 = inlined_call_operand.hbm [shape: f32[32,128], index: 4, kind: input, shape index: {}]   ;;  %s1827_s5 = inlined_call_operand.vmem [shape: f32[1,128], index: 5, kind: input, shape index: {}]   ;;  %s1828_s6 = inlined_call_operand.hbm [shape: f32[32,128], index: 6, kind: input, shape index: {}]   ;;  %s1829_s7 = inlined_call_operand.vmem [shape: f32[32,6], index: 7, kind: input, shape index: {}]   ;;  %s1830_s8 = inlined_call_operand.hbm [shape: s32[2,4], index: 8, kind: output, shape index: {0}]   ;;  %s1831_s9 = inlined_call_operand.hbm [shape: f32[2,4], index: 9, kind: output, shape index: {1}]   ;;  %s1832_s10 = inlined_call_operand.hbm [shape: f32[2,4], index: 10, kind: output, shape index: {2}]  }
   0x1   :  { %17 = vsyncpa [#allocation6], 0 }
   0x2   :  { %18 = vsyncpa [#allocation4], 0  ;;  %s41_s15 = sshll.u32 %s1826_s4, 4  ;;  %s42_s15 = int_to_ptr.hbm [resolvable:$true] %s41_s15 }
   0x3   :  { %19 = vsyncpa [#allocation10], 0  ;;  %s1375_s16 = smov [#allocation5]   ;;  %s27_s20 = sshll.u32 %s1823_s1, 4  ;;  %s28_s20 = int_to_ptr.hbm [resolvable:$true] %s27_s20 }
   0x4   :  { %s43_s17 = sshll.u32 %s1375_s16, 4  ;;  %s1376_s21 = smov 128   ;;  %s44_s17 = int_to_ptr.vmem [resolvable:$true] %s43_s17 }
   0x5   :  { %s1377_s22 = smov 8   ;;  %s1378_s23 = smov [#allocation2]  }
   0x6   :  { %49 = dma.hbm_to_vmem [thread:$0]  %s42_s15, 512, %s44_s17, [#allocation6], %s1376_s21, %s1376_s21, %s1377_s22  }
   0x7   :  { %s29_s24 = sshll.u32 %s1378_s23, 4  ;;  %s56_s27 = sshll.u32 %s1828_s6, 4  ;;  %s30_s24 = int_to_ptr.vmem [resolvable:$true] %s29_s24  ;;  %s57_s27 = int_to_ptr.hbm [resolvable:$true] %s56_s27 }
   0x8   :  { %32 = dma.hbm_to_vmem [thread:$0]  %s28_s20, 32, %s30_s24, [#allocation3]  }
   0x9   :  { %s1379_s4 = smov [#allocation7]  }
   0xa   :  { %s58_s28 = sshll.u32 %s1379_s4, 4  ;;  %s59_s28 = int_to_ptr.vmem [resolvable:$true] %s58_s28 }
   0xb   :  { %64 = dma.hbm_to_vmem [thread:$0]  %s57_s27, 512, %s59_s28, [#allocation6], %s1376_s21, %s1376_s21, %s1377_s22  }
   0xc   :  { %1367 = dma.done.wait [#allocation3], 32  }
   0xd   :  { %1368 = vsyncadd [#allocation3], 4294967264 }
   0xe   :  { %1369 = dma.done.wait [#allocation6], 1024  }
   0xf   :  { %1370 = vsyncadd [#allocation6], 4294966272  ;;  %v79_v0 = vld [vmem:[%s1822_s0] sm:$0x3]  ;;  %s1380_s0 = smov 32   ;;  %v1464_v23 = vld [vmem:[%s1825_s3 + $0x18] sm:$0xff] }
  0x10   :  { %v1092_v1 = vmul.f32 -1.442695, %v79_v0  ;;  %v1459_v22 = vld [vmem:[#allocation5 + $0x18] sm:$0xff]  ;;  %v1466_v24 = vld [vmem:[#allocation5 + $0x10] sm:$0xff]  ;;  %218 = vmatpush.msra.mxu1 %v1464_v23  ;;  %v1475_v26 = vld [vmem:[#allocation5 + $0x8] sm:$0xff]  ;;  %vm145_vm4 = vcmask 261120  }
  0x11   :  { %160 = vmatpush.msra.mxu0 %v1459_v22  ;;  %v1473_v25 = vld [vmem:[%s1825_s3 + $0x10] sm:$0xff]  ;;  %v1480_v27 = vld [vmem:[%s1825_s3 + $0x8] sm:$0xff]  ;;  %v1489_v29 = vld [vmem:[%s1825_s3] sm:$0xff]  ;;  %s1381_s3 = smov 64   ;;  %vm273_vm9 = vcmask 41984   ;;  %vm331_vm11 = vcmask 1045504  }
  0x12   :  { %1143 = vpow2.f32 %v1092_v1  ;;  %219 = vmatpush.msra.mxu1 %v1473_v25  ;;  %v1484_v28 = vld [vmem:[#allocation5] sm:$0xff]  ;;  %v1505_v33 = vld [vmem:[%s1827_s5] ss:$0 sm:$0xff]  ;;  %v1519_v58 = vld [vmem:[%s1829_s7 + $0x18] sm:$0xff]  ;;  %vm327_vm13 = vcmask 48128   ;;  %s1061_s1 = sshll.u32 %s1831_s9, 4  ;;  %s1062_s1 = int_to_ptr.hbm [resolvable:$true] %s1061_s1 }
  0x13   :  { %161 = vmatpush.msra.mxu0 %v1466_v24  ;;  %v1514_v57 = vld [vmem:[#allocation7 + $0x18] sm:$0xff]  ;;  %v1521_v59 = vld [vmem:[#allocation7 + $0x10] sm:$0xff]  ;;  %263 = vmatpush.msra.mxu3 %v1519_v58  ;;  %v1530_v61 = vld [vmem:[#allocation7 + $0x8] sm:$0xff]  ;;  %s1384_s9 = smov [#allocation11]   ;;  %s1072_s30 = sshll.u32 %s1832_s10, 4  ;;  %s1073_s30 = int_to_ptr.hbm [resolvable:$true] %s1072_s30 }
  0x14   :  { %220 = vmatpush.msra.mxu1 %v1480_v27  ;;  %243 = vmatpush.msra.mxu2 %v1514_v57  ;;  %v1528_v60 = vld [vmem:[%s1829_s7 + $0x10] sm:$0xff]  ;;  %v1535_v62 = vld [vmem:[%s1829_s7 + $0x8] sm:$0xff]  ;;  %v1544_v0 = vld [vmem:[%s1829_s7] sm:$0xff]  ;;  %s1070_s29 = sshll.u32 %s1384_s9, 4  ;;  %s1385_s11 = smov [#allocation8]   ;;  %s1071_s29 = int_to_ptr.vmem [resolvable:$true] %s1070_s29 }
  0x15   :  { %162 = vmatpush.msra.mxu0 %v1475_v26  ;;  %264 = vmatpush.msra.mxu3 %v1528_v60  ;;  %v1539_v63 = vld [vmem:[#allocation7] sm:$0xff]  ;;  %s1048_s10 = sshll.u32 %s1385_s11, 4  ;;  %s1050_s14 = sshll.u32 %s1830_s8, 4  ;;  %s1049_s10 = int_to_ptr.vmem [resolvable:$true] %s1048_s10  ;;  %s1051_s14 = int_to_ptr.hbm [resolvable:$true] %s1050_s14 }
  0x16   :  { %221 = vmatpush.msra.mxu1 %v1489_v29  ;;  %244 = vmatpush.msra.mxu2 %v1521_v59 }
  0x17   :  { %163 = vmatpush.msra.mxu0 %v1484_v28  ;;  %265 = vmatpush.msra.mxu3 %v1535_v62 }
  0x18   :  { %v1144_v2 = vpop.eup %1143  ;;  %411 = vmatpush.msrb.mxu1 %v1459_v22  ;;  %245 = vmatpush.msra.mxu2 %v1530_v61 }
  0x19   :  { %v104_v3 = vadd.f32 1.0, %v1144_v2  ;;  %266 = vmatpush.msra.mxu3 %v1544_v0 }
  0x1a   :  { %412 = vmatpush.msrb.mxu1 %v1466_v24  ;;  %246 = vmatpush.msra.mxu2 %v1539_v63 }
  0x1b   :  { %1145 = vrcp.f32 %v104_v3  ;;  %v116_v6 = vand.u32 2147483648, %v104_v3  ;;  %vm110_vm0 = vweird.f32 %v104_v3  ;;  %v114_v8 = vand.u32 2147483647, %v104_v3  ;;  %495 = vmatpush.msrb.mxu3 %v1514_v57 }
  0x1c   :  { %413 = vmatpush.msrb.mxu1 %v1475_v26  ;;  %470 = vmatpush.msrb.mxu2 %v1464_v23 }
  0x1d   :  { %v117_v10 = vor.u32 1.1754944e-38, %v116_v6  ;;  %vm115_vm3 = vcmp.eq.f32.partialorder %v114_v8, 8.507059e+37  ;;  %496 = vmatpush.msrb.mxu3 %v1521_v59  ;;  %v99_v8 = vlaneseq }
  0x1e   :  { %414 = vmatpush.msrb.mxu1 %v1484_v28  ;;  %471 = vmatpush.msrb.mxu2 %v1473_v25 }
  0x1f   :  { %497 = vmatpush.msrb.mxu3 %v1530_v61 }
  0x20   :  { %472 = vmatpush.msrb.mxu2 %v1480_v27 }
  0x21   :  { %v1146_v4 = vpop.eup %1145  ;;  %498 = vmatpush.msrb.mxu3 %v1539_v63 }
  0x22   :  { %v106_v5 = vmul.f32 %v1146_v4, %v104_v3  ;;  %vm111_vm1 = vweird.f32 %v1146_v4  ;;  %473 = vmatpush.msrb.mxu2 %v1489_v29 }
  0x23   :  { %vm112_vm2 = vmor %vm110_vm0, %vm111_vm1 }
  0x24   :  { %v107_v7 = vsub.f32 1.0, %v106_v5 }
  0x26   :  { %v108_v9 = vmul.f32 %v1146_v4, %v107_v7 }
  0x28   :  { %v109_v11 = vadd.f32 %v1146_v4, %v108_v9  ;;  %v1573_v9 = vand.u32 127, %v99_v8 }
  0x2a   :  { %v113_v12 = vsel %vm112_vm2, %v1146_v4, %v109_v11 }
  0x2b   :  { %v118_v13 = vsel %vm115_vm3, %v117_v10, %v113_v12 }
  0x2c   :  { %v120_v14 = vmul.f32 2.0, %v118_v13  ;;  %v122_v18 = vmul.f32 0.0, %v118_v13 }
  0x2e   :  { %v1093_v15 = vadd.f32 -1.0, %v120_v14 }
  0x30   :  { %124 = vrot.lane.b32.xlu0 %v1093_v15, %s1380_s0  ;;  %v1584_v15 = vld [vmem:[%s1824_s2] sm:$0x3f]  ;;  %s1383_s2 = smov [#allocation9]  }
  0x31   :  { %1101 = vmatpush.msk.msrb.mxu0 %vm331_vm11, %v1584_v15  ;;  %s1790_s27 = sshll.u32 %s1383_s2, 4  ;;  %s1060_s27 = int_to_ptr.vmem [resolvable:$true] %s1790_s27 }
  0xa2   :  { %v125_v16 = vpop.permute.xlu0 %124 }
  0xa3   :  { %v127_v17 = vmul.f32 %v125_v16, %v118_v13 }
  0xa5   :  { %129 = vrot.lane.b32.xlu0 %v127_v17, %s1380_s0 }
 0x117   :  { %v130_v19 = vpop.permute.xlu0 %129 }
 0x118   :  { %v1455_v20 = vadd.f32 %v130_v19, %v122_v18 }
 0x11a   :  { %1147 = vtanh.f32 %v1455_v20 }
 0x120   :  { %v1148_v21 = vpop.eup %1147 }
 0x121   :  { %135 = vrot.lane.b32.xlu1 %v1148_v21, %s1380_s0 }
 0x193   :  { %v136_v30 = vpop.permute.xlu1 %135 }
 0x194   :  { %v138_v31 = vmul.f32 %v136_v30, %v118_v13  ;;  %v1382_v30 = vmov 0.0  }
 0x196   :  { %143 = vrot.lane.b32.xlu1 %v138_v31, %s1381_s3 }
 0x208   :  { %v144_v32 = vpop.permute.xlu1 %143 }
 0x209   :  { %1094 = vmatmul.msk.f32.vlgmr.msra.gmra.mxu0 %vm145_vm4, %v144_v32  ;;  %1097 = vmatmul.msk.f32.vlgmr.msra.gmra.mxu1 %vm145_vm4, %v144_v32  ;;  %v1604_v32 = vld [vmem:[#allocation2] sm:$0x3] }
 0x20a   :  { %1112 = vmatpush.msk.msra.mxu1 %vm331_vm11, %v1584_v15  ;;  %515 = vmatpush.msra.mxu0 %v1519_v58 }
 0x20c   :  { %516 = vmatpush.msra.mxu0 %v1528_v60 }
 0x20e   :  { %517 = vmatpush.msra.mxu0 %v1535_v62 }
 0x210   :  { %518 = vmatpush.msra.mxu0 %v1544_v0 }
 0x286   :  { %v165_v34 = vpop.f32.mrf.mxu0 }
 0x287   :  { %v166_v35 = vadd.f32 %v1505_v33, %v165_v34 }
 0x289   :  { %v1095_v36 = vmul.f32 -1.442695, %v166_v35 }
 0x28b   :  { %1149 = vpow2.f32 %v1095_v36  ;;  %v223_v36 = vpop.f32.mrf.mxu1 }
 0x291   :  { %v1150_v37 = vpop.eup %1149 }
 0x292   :  { %v171_v38 = vadd.f32 1.0, %v1150_v37 }
 0x294   :  { %1151 = vrcp.f32 %v171_v38  ;;  %v183_v42 = vand.u32 2147483648, %v171_v38  ;;  %v181_v44 = vand.u32 2147483647, %v171_v38  ;;  %vm177_vm6 = vweird.f32 %v171_v38 }
 0x296   :  { %v184_v46 = vor.u32 1.1754944e-38, %v183_v42  ;;  %vm182_vm8 = vcmp.eq.f32.partialorder %v181_v44, 8.507059e+37 }
 0x29a   :  { %v1152_v39 = vpop.eup %1151 }
 0x29b   :  { %v173_v40 = vmul.f32 %v1152_v39, %v171_v38  ;;  %vm178_vm5 = vweird.f32 %v1152_v39 }
 0x29c   :  { %vm179_vm7 = vmor %vm177_vm6, %vm178_vm5 }
 0x29d   :  { %v174_v41 = vsub.f32 1.0, %v173_v40 }
 0x29f   :  { %v175_v43 = vmul.f32 %v1152_v39, %v174_v41 }
 0x2a1   :  { %v176_v45 = vadd.f32 %v1152_v39, %v175_v43 }
 0x2a3   :  { %v180_v47 = vsel %vm179_vm7, %v1152_v39, %v176_v45 }
 0x2a4   :  { %v185_v48 = vsel %vm182_vm8, %v184_v46, %v180_v47 }
 0x2a5   :  { %v187_v49 = vmul.f32 2.0, %v185_v48  ;;  %v189_v53 = vmul.f32 0.0, %v185_v48 }
 0x2a7   :  { %v1096_v50 = vadd.f32 -1.0, %v187_v49 }
 0x2a9   :  { %191 = vrot.lane.b32.xlu2 %v1096_v50, %s1380_s0 }
 0x303   :  { %v192_v51 = vpop.permute.xlu2 %191 }
 0x304   :  { %v194_v52 = vmul.f32 %v192_v51, %v185_v48 }
 0x306   :  { %196 = vrot.lane.b32.xlu2 %v194_v52, %s1380_s0 }
 0x360   :  { %v197_v54 = vpop.permute.xlu2 %196 }
 0x361   :  { %v1510_v55 = vadd.f32 %v197_v54, %v189_v53 }
 0x363   :  { %1153 = vtanh.f32 %v1510_v55 }
 0x369   :  { %v1154_v56 = vpop.eup %1153 }
 0x36a   :  { %202 = vrot.lane.b32.xlu0 %v1154_v56, %s1380_s0 }
 0x3dc   :  { %v203_v1 = vpop.permute.xlu0 %202 }
 0x3dd   :  { %v205_v2 = vmul.f32 %v203_v1, %v185_v48 }
 0x3df   :  { %227 = vrot.lane.b32.xlu1 %v205_v2, %s1381_s3 }
 0x451   :  { %v228_v3 = vpop.permute.xlu1 %227 }
 0x452   :  { %1098 = vmatmul.msk.f32.vlgmr.msra.gmra.mxu2 %vm145_vm4, %v228_v3  ;;  %1099 = vmatmul.msk.f32.vlgmr.msra.gmra.mxu3 %vm145_vm4, %v228_v3 }
 0x453   :  { %657 = vmatpush.msra.mxu2 %v1459_v22  ;;  %716 = vmatpush.msra.mxu3 %v1464_v23 }
 0x455   :  { %658 = vmatpush.msra.mxu2 %v1466_v24  ;;  %717 = vmatpush.msra.mxu3 %v1473_v25 }
 0x457   :  { %659 = vmatpush.msra.mxu2 %v1475_v26  ;;  %718 = vmatpush.msra.mxu3 %v1480_v27 }
 0x459   :  { %660 = vmatpush.msra.mxu2 %v1484_v28  ;;  %719 = vmatpush.msra.mxu3 %v1489_v29 }
 0x4d5   :  { %v268_v4 = vpop.f32.mrf.mxu3 }
 0x4d6   :  { %1155 = vtanh.f32 %v268_v4  ;;  %v248_v4 = vpop.f32.mrf.mxu2 }
 0x4dc   :  { %v1156_v5 = vpop.eup %1155 }
 0x4dd   :  { %v1569_v6 = vmul.f32 1.5, %v1156_v5 }
 0x4df   :  { %v274_v7 = vsel %vm273_vm9, %v1569_v6, -inf }
 0x4e0   :  { %275 = vmax.xlane.f32.xlu2 %v274_v7 }
 0x553   :  { %v1575_v10 = vpop.xlane.xlu2 %275 }
 0x554   :  { %vm277_vm10 = vcmp.eq.f32.partialorder %v1569_v6, %v1575_v10 }
 0x555   :  { %v278_v11 = vsel %vm277_vm10, %v1573_v9, 6 }
 0x556   :  { %v279_v12 = vsel %vm273_vm9, %v278_v11, 2147483647 }
 0x557   :  { %v281_v13 = vshra.s32 %v279_v12, 16  ;;  %v280_v16 = vand.u32 65535, %v279_v12 }
 0x559   :  { %v283_v14 = vcvt.s32.f32 %v281_v13  ;;  %v282_v18 = vcvt.s32.f32 %v280_v16 }
 0x55b   :  { %284 = vmin.xlane.f32.xlu0 %v283_v14 }
 0x5ce   :  { %v285_v17 = vpop.xlane.xlu0 %284 }
 0x5cf   :  { %vm286_vm12 = vcmp.eq.f32.partialorder %v283_v14, %v285_v17  ;;  %v291_v21 = vcvt.f32.s32 %v285_v17 }
 0x5d0   :  { %v287_v19 = vsel %vm286_vm12, %v282_v18, inf }
 0x5d1   :  { %288 = vmin.xlane.f32.xlu1 %v287_v19  ;;  %v292_v25 = vshll.u32 %v291_v21, 16 }
 0x644   :  { %v289_v23 = vpop.xlane.xlu1 %288 }
 0x645   :  { %v290_v27 = vcvt.f32.s32 %v289_v23 }
 0x647   :  { %v1594_v29 = vadd.s32 %v292_v25, %v290_v27 }
 0x649   :  { %vm294_vm14 = vcmp.eq.s32.totalorder %v1573_v9, %v1594_v29 }
 0x64a   :  { %v1100_v31 = vsel %vm294_vm14, 1.0, %v1382_v30 }
 0x64b   :  { %1102 = vmatmul.msk.f32.vlgmr.msrb.gmra.mxu0 %vm327_vm13, %v1100_v31 }
 0x64c   :  { %741 = vmatpush.msrb.mxu0 %v1514_v57 }
 0x64e   :  { %742 = vmatpush.msrb.mxu0 %v1521_v59 }
 0x650   :  { %743 = vmatpush.msrb.mxu0 %v1530_v61 }
 0x652   :  { %744 = vmatpush.msrb.mxu0 %v1539_v63 }
 0x6c8   :  { %v352_v34 = vpop.f32.mrf.mxu0 }
 0x6c9   :  { %v353_v35 = vadd.f32 %v352_v34, %v1604_v32 }
 0x6cb   :  { %v355_v37 = vadd.f32 %v353_v35, %v223_v36 }
 0x6cd   :  { %v1103_v38 = vmul.f32 -1.442695, %v355_v37 }
 0x6cf   :  { %1157 = vpow2.f32 %v1103_v38 }
 0x6d5   :  { %v1158_v39 = vpop.eup %1157 }
 0x6d6   :  { %v359_v40 = vadd.f32 1.0, %v1158_v39 }
 0x6d8   :  { %1159 = vrcp.f32 %v359_v40  ;;  %v371_v44 = vand.u32 2147483648, %v359_v40  ;;  %v369_v46 = vand.u32 2147483647, %v359_v40  ;;  %vm365_vm0 = vweird.f32 %v359_v40 }
 0x6da   :  { %v372_v48 = vor.u32 1.1754944e-38, %v371_v44  ;;  %vm370_vm2 = vcmp.eq.f32.partialorder %v369_v46, 8.507059e+37 }
 0x6de   :  { %v1160_v41 = vpop.eup %1159 }
 0x6df   :  { %v361_v42 = vmul.f32 %v1160_v41, %v359_v40  ;;  %vm366_vm15 = vweird.f32 %v1160_v41 }
 0x6e0   :  { %vm367_vm1 = vmor %vm365_vm0, %vm366_vm15 }
 0x6e1   :  { %v362_v43 = vsub.f32 1.0, %v361_v42 }
 0x6e3   :  { %v363_v45 = vmul.f32 %v1160_v41, %v362_v43 }
 0x6e5   :  { %v364_v47 = vadd.f32 %v1160_v41, %v363_v45 }
 0x6e7   :  { %v368_v49 = vsel %vm367_vm1, %v1160_v41, %v364_v47 }
 0x6e8   :  { %v373_v50 = vsel %vm370_vm2, %v372_v48, %v368_v49 }
 0x6e9   :  { %v375_v51 = vmul.f32 2.0, %v373_v50  ;;  %v377_v56 = vmul.f32 %v373_v50, %v1455_v20 }
 0x6eb   :  { %v1104_v52 = vadd.f32 -1.0, %v375_v51 }
 0x6ed   :  { %379 = vrot.lane.b32.xlu2 %v1104_v52, %s1380_s0 }
 0x747   :  { %v380_v53 = vpop.permute.xlu2 %379 }
 0x748   :  { %v382_v54 = vmul.f32 %v380_v53, %v373_v50 }
 0x74a   :  { %384 = vrot.lane.b32.xlu0 %v382_v54, %s1380_s0 }
 0x7bc   :  { %v385_v57 = vpop.permute.xlu0 %384 }
 0x7bd   :  { %v1610_v59 = vadd.f32 %v385_v57, %v377_v56 }
 0x7bf   :  { %1161 = vtanh.f32 %v1610_v59 }
 0x7c5   :  { %v1162_v61 = vpop.eup %1161 }
 0x7c6   :  { %390 = vrot.lane.b32.xlu1 %v1162_v61, %s1380_s0 }
 0x838   :  { %v391_v63 = vpop.permute.xlu1 %390 }
 0x839   :  { %v393_v1 = vmul.f32 %v391_v63, %v373_v50 }
 0x83b   :  { %395 = vrot.lane.b32.xlu2 %v393_v1, %s1381_s3 }
 0x895   :  { %v396_v2 = vpop.permute.xlu2 %395 }
 0x896   :  { %1105 = vmatmul.msk.f32.vlgmr.msrb.gmra.mxu1 %vm145_vm4, %v396_v2  ;;  %1108 = vmatmul.msk.f32.vlgmr.msrb.gmra.mxu2 %vm145_vm4, %v396_v2 }
 0x897   :  { %761 = vmatpush.msrb.mxu1 %v1519_v58  ;;  %1123 = vmatpush.msk.msrb.mxu2 %vm331_vm11, %v1584_v15 }
 0x899   :  { %762 = vmatpush.msrb.mxu1 %v1528_v60 }
 0x89b   :  { %763 = vmatpush.msrb.mxu1 %v1535_v62 }
 0x89d   :  { %764 = vmatpush.msrb.mxu1 %v1544_v0 }
 0x913   :  { %v416_v20 = vpop.f32.mrf.mxu1 }
 0x914   :  { %v417_v3 = vadd.f32 %v1505_v33, %v416_v20 }
 0x916   :  { %v419_v5 = vadd.f32 %v417_v3, %v248_v4 }
 0x918   :  { %v1106_v7 = vmul.f32 -1.442695, %v419_v5 }
 0x919   :  { %v475_v54 = vpop.f32.mrf.mxu2 }
 0x91a   :  { %1163 = vpow2.f32 %v1106_v7 }
 0x920   :  { %v1164_v8 = vpop.eup %1163 }
 0x921   :  { %v423_v11 = vadd.f32 1.0, %v1164_v8 }
 0x923   :  { %1165 = vrcp.f32 %v423_v11  ;;  %v435_v15 = vand.u32 2147483648, %v423_v11  ;;  %v433_v17 = vand.u32 2147483647, %v423_v11  ;;  %vm429_vm5 = vweird.f32 %v423_v11 }
 0x925   :  { %v436_v19 = vor.u32 1.1754944e-38, %v435_v15  ;;  %vm434_vm7 = vcmp.eq.f32.partialorder %v433_v17, 8.507059e+37 }
 0x929   :  { %v1166_v12 = vpop.eup %1165 }
 0x92a   :  { %v425_v13 = vmul.f32 %v1166_v12, %v423_v11  ;;  %vm430_vm3 = vweird.f32 %v1166_v12 }
 0x92b   :  { %vm431_vm6 = vmor %vm429_vm5, %vm430_vm3 }
 0x92c   :  { %v426_v14 = vsub.f32 1.0, %v425_v13 }
 0x92e   :  { %v427_v16 = vmul.f32 %v1166_v12, %v426_v14 }
 0x930   :  { %v428_v18 = vadd.f32 %v1166_v12, %v427_v16 }
 0x932   :  { %v432_v21 = vsel %vm431_vm6, %v1166_v12, %v428_v18 }
 0x933   :  { %v437_v23 = vsel %vm434_vm7, %v436_v19, %v432_v21 }
 0x934   :  { %v439_v25 = vmul.f32 2.0, %v437_v23  ;;  %v441_v35 = vmul.f32 %v437_v23, %v1510_v55 }
 0x936   :  { %v1107_v27 = vadd.f32 -1.0, %v439_v25 }
 0x938   :  { %443 = vrot.lane.b32.xlu0 %v1107_v27, %s1380_s0 }
 0x9aa   :  { %v444_v31 = vpop.permute.xlu0 %443 }
 0x9ab   :  { %v446_v34 = vmul.f32 %v444_v31, %v437_v23 }
 0x9ad   :  { %448 = vrot.lane.b32.xlu2 %v446_v34, %s1380_s0 }
 0xa07   :  { %v449_v36 = vpop.permute.xlu2 %448 }
 0xa08   :  { %v1627_v37 = vadd.f32 %v449_v36, %v441_v35 }
 0xa0a   :  { %1167 = vtanh.f32 %v1627_v37 }
 0xa10   :  { %v1168_v38 = vpop.eup %1167 }
 0xa11   :  { %454 = vrot.lane.b32.xlu1 %v1168_v38, %s1380_s0 }
 0xa83   :  { %v455_v39 = vpop.permute.xlu1 %454 }
 0xa84   :  { %v457_v40 = vmul.f32 %v455_v39, %v437_v23 }
 0xa86   :  { %479 = vrot.lane.b32.xlu0 %v457_v40, %s1381_s3 }
 0xaf8   :  { %v480_v41 = vpop.permute.xlu0 %479 }
 0xaf9   :  { %1109 = vmatmul.msk.f32.vlgmr.msrb.gmra.mxu3 %vm145_vm4, %v480_v41  ;;  %1110 = vmatmul.msk.f32.vlgmr.msra.gmra.mxu0 %vm145_vm4, %v480_v41 }
 0xafa   :  { %903 = vmatpush.msrb.mxu3 %v1459_v22  ;;  %967 = vmatpush.msra.mxu0 %v1519_v58 }
 0xafc   :  { %904 = vmatpush.msrb.mxu3 %v1466_v24  ;;  %968 = vmatpush.msra.mxu0 %v1528_v60 }
 0xafe   :  { %905 = vmatpush.msrb.mxu3 %v1475_v26  ;;  %969 = vmatpush.msra.mxu0 %v1535_v62 }
 0xb00   :  { %906 = vmatpush.msrb.mxu3 %v1484_v28  ;;  %970 = vmatpush.msra.mxu0 %v1544_v0 }
 0xb76   :  { %v520_v55 = vpop.f32.mrf.mxu0 }
 0xb77   :  { %1169 = vtanh.f32 %v520_v55 }
 0xb7c   :  { %v500_v34 = vpop.f32.mrf.mxu3 }
 0xb7d   :  { %v1170_v42 = vpop.eup %1169 }
 0xb7e   :  { %v1642_v43 = vmul.f32 1.5, %v1170_v42 }
 0xb80   :  { %v525_v22 = vsel %vm273_vm9, %v1642_v43, -inf }
 0xb81   :  { %526 = vmax.xlane.f32.xlu2 %v525_v22 }
 0xbf4   :  { %v1646_v24 = vpop.xlane.xlu2 %526 }
 0xbf5   :  { %vm528_vm8 = vcmp.eq.f32.partialorder %v1642_v43, %v1646_v24 }
 0xbf6   :  { %v529_v26 = vsel %vm528_vm8, %v1573_v9, 6  ;;  %vm1027_vm8 = vcmask 7168  }
 0xbf7   :  { %v530_v28 = vsel %vm273_vm9, %v529_v26, 2147483647 }
 0xbf8   :  { %v532_v58 = vshra.s32 %v530_v28, 16  ;;  %v531_v62 = vand.u32 65535, %v530_v28 }
 0xbfa   :  { %v534_v60 = vcvt.s32.f32 %v532_v58  ;;  %v533_v44 = vcvt.s32.f32 %v531_v62 }
 0xbfc   :  { %535 = vmin.xlane.f32.xlu1 %v534_v60 }
 0xc6f   :  { %v536_v0 = vpop.xlane.xlu1 %535 }
 0xc70   :  { %vm537_vm10 = vcmp.eq.f32.partialorder %v534_v60, %v536_v0  ;;  %v542_v46 = vcvt.f32.s32 %v536_v0 }
 0xc71   :  { %v538_v45 = vsel %vm537_vm10, %v533_v44, inf  ;;  %vm1029_vm10 = vcmask 15360  }
 0xc72   :  { %539 = vmin.xlane.f32.xlu0 %v538_v45  ;;  %v543_v48 = vshll.u32 %v542_v46, 16 }
 0xce5   :  { %v540_v47 = vpop.xlane.xlu0 %539 }
 0xce6   :  { %v541_v49 = vcvt.f32.s32 %v540_v47 }
 0xce8   :  { %v1652_v50 = vadd.s32 %v543_v48, %v541_v49 }
 0xcea   :  { %vm545_vm11 = vcmp.eq.s32.totalorder %v1573_v9, %v1652_v50 }
 0xceb   :  { %v1111_v51 = vsel %vm545_vm11, 1.0, %v1382_v30 }
 0xcec   :  { %1113 = vmatmul.msk.f32.vlgmr.msra.gmra.mxu1 %vm327_vm13, %v1111_v51 }
 0xd69   :  { %v598_v52 = vpop.f32.mrf.mxu1 }
 0xd6a   :  { %v599_v53 = vadd.f32 %v598_v52, %v1604_v32 }
 0xd6c   :  { %v601_v56 = vadd.f32 %v599_v53, %v475_v54 }
 0xd6e   :  { %v1114_v57 = vmul.f32 -1.442695, %v601_v56 }
 0xd70   :  { %1171 = vpow2.f32 %v1114_v57 }
 0xd76   :  { %v1172_v61 = vpop.eup %1171 }
 0xd77   :  { %v605_v63 = vadd.f32 1.0, %v1172_v61 }
 0xd79   :  { %1173 = vrcp.f32 %v605_v63  ;;  %v617_v3 = vand.u32 2147483648, %v605_v63  ;;  %v615_v5 = vand.u32 2147483647, %v605_v63  ;;  %vm611_vm14 = vweird.f32 %v605_v63 }
 0xd7b   :  { %v618_v8 = vor.u32 1.1754944e-38, %v617_v3  ;;  %vm616_vm0 = vcmp.eq.f32.partialorder %v615_v5, 8.507059e+37 }
 0xd7f   :  { %v1174_v1 = vpop.eup %1173 }
 0xd80   :  { %v607_v2 = vmul.f32 %v1174_v1, %v605_v63  ;;  %vm612_vm12 = vweird.f32 %v1174_v1 }
 0xd81   :  { %vm613_vm15 = vmor %vm611_vm14, %vm612_vm12 }
 0xd82   :  { %v608_v20 = vsub.f32 1.0, %v607_v2 }
 0xd84   :  { %v609_v4 = vmul.f32 %v1174_v1, %v608_v20 }
 0xd86   :  { %v610_v7 = vadd.f32 %v1174_v1, %v609_v4 }
 0xd88   :  { %v614_v11 = vsel %vm613_vm15, %v1174_v1, %v610_v7 }
 0xd89   :  { %v619_v12 = vsel %vm616_vm0, %v618_v8, %v614_v11 }
 0xd8a   :  { %v621_v13 = vmul.f32 2.0, %v619_v12  ;;  %v623_v17 = vmul.f32 %v619_v12, %v1610_v59 }
 0xd8c   :  { %v1115_v14 = vadd.f32 -1.0, %v621_v13 }
 0xd8e   :  { %625 = vrot.lane.b32.xlu2 %v1115_v14, %s1380_s0 }
 0xde8   :  { %v626_v15 = vpop.permute.xlu2 %625 }
 0xde9   :  { %v628_v16 = vmul.f32 %v626_v15, %v619_v12 }
 0xdeb   :  { %630 = vrot.lane.b32.xlu1 %v628_v16, %s1380_s0  ;;  %v1028_v16 = vsel %vm1027_vm8, %v1594_v29, %v1652_v50 }
 0xe5d   :  { %v631_v18 = vpop.permute.xlu1 %630 }
 0xe5e   :  { %v1662_v19 = vadd.f32 %v631_v18, %v623_v17 }
 0xe60   :  { %1175 = vtanh.f32 %v1662_v19 }
 0xe66   :  { %v1176_v21 = vpop.eup %1175 }
 0xe67   :  { %636 = vrot.lane.b32.xlu0 %v1176_v21, %s1380_s0 }
 0xed9   :  { %v637_v23 = vpop.permute.xlu0 %636 }
 0xeda   :  { %v639_v25 = vmul.f32 %v637_v23, %v619_v12 }
 0xedc   :  { %641 = vrot.lane.b32.xlu2 %v639_v25, %s1381_s3 }
 0xf36   :  { %v642_v27 = vpop.permute.xlu2 %641 }
 0xf37   :  { %1116 = vmatmul.msk.f32.vlgmr.msra.gmra.mxu2 %vm145_vm4, %v642_v27  ;;  %1119 = vmatmul.msk.f32.vlgmr.msra.gmra.mxu3 %vm145_vm4, %v642_v27 }
 0xfba   :  { %v662_v31 = vpop.f32.mrf.mxu2  ;;  %v721_v25 = vpop.f32.mrf.mxu3 }
 0xfbb   :  { %v663_v59 = vadd.f32 %v1505_v33, %v662_v31 }
 0xfbd   :  { %v665_v35 = vadd.f32 %v663_v59, %v500_v34 }
 0xfbf   :  { %v1117_v36 = vmul.f32 -1.442695, %v665_v35 }
 0xfc1   :  { %1177 = vpow2.f32 %v1117_v36 }
 0xfc7   :  { %v1178_v38 = vpop.eup %1177 }
 0xfc8   :  { %v669_v39 = vadd.f32 1.0, %v1178_v38 }
 0xfca   :  { %1179 = vrcp.f32 %v669_v39  ;;  %v681_v42 = vand.u32 2147483648, %v669_v39  ;;  %v679_v26 = vand.u32 2147483647, %v669_v39  ;;  %vm675_vm2 = vweird.f32 %v669_v39 }
 0xfcc   :  { %v682_v58 = vor.u32 1.1754944e-38, %v681_v42  ;;  %vm680_vm5 = vcmp.eq.f32.partialorder %v679_v26, 8.507059e+37 }
 0xfd0   :  { %v1180_v40 = vpop.eup %1179 }
 0xfd1   :  { %v671_v41 = vmul.f32 %v1180_v40, %v669_v39  ;;  %vm676_vm1 = vweird.f32 %v1180_v40 }
 0xfd2   :  { %vm677_vm3 = vmor %vm675_vm2, %vm676_vm1 }
 0xfd3   :  { %v672_v55 = vsub.f32 1.0, %v671_v41 }
 0xfd5   :  { %v673_v22 = vmul.f32 %v1180_v40, %v672_v55 }
 0xfd7   :  { %v674_v28 = vadd.f32 %v1180_v40, %v673_v22 }
 0xfd9   :  { %v678_v60 = vsel %vm677_vm3, %v1180_v40, %v674_v28 }
 0xfda   :  { %v683_v62 = vsel %vm680_vm5, %v682_v58, %v678_v60 }
 0xfdb   :  { %v685_v0 = vmul.f32 2.0, %v683_v62  ;;  %v687_v47 = vmul.f32 %v683_v62, %v1627_v37 }
 0xfdd   :  { %v1118_v44 = vadd.f32 -1.0, %v685_v0 }
 0xfdf   :  { %689 = vrot.lane.b32.xlu0 %v1118_v44, %s1380_s0 }
0x1051   :  { %v690_v45 = vpop.permute.xlu0 %689 }
0x1052   :  { %v692_v46 = vmul.f32 %v690_v45, %v683_v62 }
0x1054   :  { %694 = vrot.lane.b32.xlu1 %v692_v46, %s1380_s0 }
0x10c6   :  { %v695_v48 = vpop.permute.xlu1 %694 }
0x10c7   :  { %v1673_v49 = vadd.f32 %v695_v48, %v687_v47 }
0x10c9   :  { %1181 = vtanh.f32 %v1673_v49 }
0x10cf   :  { %v1182_v51 = vpop.eup %1181 }
0x10d0   :  { %700 = vrot.lane.b32.xlu2 %v1182_v51, %s1380_s0 }
0x112a   :  { %v701_v52 = vpop.permute.xlu2 %700 }
0x112b   :  { %v703_v53 = vmul.f32 %v701_v52, %v683_v62 }
0x112d   :  { %725 = vrot.lane.b32.xlu0 %v703_v53, %s1381_s3 }
0x119f   :  { %v726_v54 = vpop.permute.xlu0 %725 }
0x11a0   :  { %1120 = vmatmul.msk.f32.vlgmr.msrb.gmra.mxu0 %vm145_vm4, %v726_v54  ;;  %1121 = vmatmul.msk.f32.vlgmr.msrb.gmra.mxu1 %vm145_vm4, %v726_v54 }
0x121d   :  { %v766_v56 = vpop.f32.mrf.mxu1  ;;  %v746_v48 = vpop.f32.mrf.mxu0 }
0x121e   :  { %1183 = vtanh.f32 %v766_v56 }
0x1224   :  { %v1184_v37 = vpop.eup %1183 }
0x1225   :  { %v1680_v57 = vmul.f32 1.5, %v1184_v37 }
0x1227   :  { %v771_v61 = vsel %vm273_vm9, %v1680_v57, -inf }
0x1228   :  { %772 = vmax.xlane.f32.xlu1 %v771_v61 }
0x129b   :  { %v1684_v63 = vpop.xlane.xlu1 %772 }
0x129c   :  { %vm774_vm6 = vcmp.eq.f32.partialorder %v1680_v57, %v1684_v63 }
0x129d   :  { %v775_v1 = vsel %vm774_vm6, %v1573_v9, 6 }
0x129e   :  { %v776_v2 = vsel %vm273_vm9, %v775_v1, 2147483647 }
0x129f   :  { %v778_v20 = vshra.s32 %v776_v2, 16  ;;  %v777_v4 = vand.u32 65535, %v776_v2 }
0x12a1   :  { %v780_v3 = vcvt.s32.f32 %v778_v20  ;;  %v779_v7 = vcvt.s32.f32 %v777_v4 }
0x12a3   :  { %781 = vmin.xlane.f32.xlu2 %v780_v3 }
0x1316   :  { %v782_v5 = vpop.xlane.xlu2 %781 }
0x1317   :  { %vm783_vm7 = vcmp.eq.f32.partialorder %v780_v3, %v782_v5  ;;  %v788_v11 = vcvt.f32.s32 %v782_v5 }
0x1318   :  { %v784_v8 = vsel %vm783_vm7, %v779_v7, inf }
0x1319   :  { %785 = vmin.xlane.f32.xlu0 %v784_v8  ;;  %v789_v13 = vshll.u32 %v788_v11, 16 }
0x138c   :  { %v786_v12 = vpop.xlane.xlu0 %785 }
0x138d   :  { %v787_v14 = vcvt.f32.s32 %v786_v12 }
0x138f   :  { %v790_v15 = vadd.s32 %v789_v13, %v787_v14 }
0x1391   :  { %vm791_vm11 = vcmp.eq.s32.totalorder %v1573_v9, %v790_v15  ;;  %v1695_v17 = vsel %vm1029_vm10, %v1028_v16, %v790_v15 }
0x1392   :  { %v1122_v18 = vsel %vm791_vm11, 1.0, %v1382_v30 }
0x1393   :  { %1124 = vmatmul.msk.f32.vlgmr.msrb.gmra.mxu2 %vm327_vm13, %v1122_v18 }
0x1416   :  { %v844_v21 = vpop.f32.mrf.mxu2 }
0x1417   :  { %v845_v23 = vadd.f32 %v844_v21, %v1604_v32  ;;  %v297_v21 = vsub.f32 %v1569_v6, %v1575_v10 }
0x1419   :  { %v847_v27 = vadd.f32 %v845_v23, %v721_v25  ;;  %v298_v23 = vmul.f32 1.442695, %v297_v21 }
0x141b   :  { %v1125_v31 = vmul.f32 -1.442695, %v847_v27 }
0x141d   :  { %1185 = vpow2.f32 %v1125_v31 }
0x1423   :  { %v1186_v59 = vpop.eup %1185 }
0x1424   :  { %v851_v34 = vadd.f32 1.0, %v1186_v59  ;;  %v548_v59 = vsub.f32 %v1642_v43, %v1646_v24 }
0x1426   :  { %1187 = vrcp.f32 %v851_v34  ;;  %v863_v36 = vand.u32 2147483648, %v851_v34  ;;  %v861_v39 = vand.u32 2147483647, %v851_v34  ;;  %vm857_vm14 = vweird.f32 %v851_v34 }
0x1428   :  { %v864_v40 = vor.u32 1.1754944e-38, %v863_v36  ;;  %vm862_vm15 = vcmp.eq.f32.partialorder %v861_v39, 8.507059e+37 }
0x142c   :  { %v1188_v29 = vpop.eup %1187 }
0x142d   :  { %v853_v50 = vmul.f32 %v1188_v29, %v851_v34  ;;  %vm858_vm12 = vweird.f32 %v1188_v29  ;;  %v549_v34 = vmul.f32 1.442695, %v548_v59 }
0x142e   :  { %vm859_vm13 = vmor %vm857_vm14, %vm858_vm12 }
0x142f   :  { %v854_v35 = vsub.f32 1.0, %v853_v50 }
0x1431   :  { %v855_v38 = vmul.f32 %v1188_v29, %v854_v35 }
0x1433   :  { %v856_v30 = vadd.f32 %v1188_v29, %v855_v38 }
0x1435   :  { %v860_v41 = vsel %vm859_vm13, %v1188_v29, %v856_v30 }
0x1436   :  { %v865_v32 = vsel %vm862_vm15, %v864_v40, %v860_v41  ;;  %v794_v40 = vsub.f32 %v1680_v57, %v1684_v63 }
0x1437   :  { %v867_v55 = vmul.f32 2.0, %v865_v32  ;;  %v869_v28 = vmul.f32 %v865_v32, %v1662_v19 }
0x1439   :  { %v1126_v42 = vadd.f32 -1.0, %v867_v55  ;;  %v795_v55 = vmul.f32 1.442695, %v794_v40 }
0x143b   :  { %871 = vrot.lane.b32.xlu1 %v1126_v42, %s1380_s0 }
0x14ad   :  { %v872_v22 = vpop.permute.xlu1 %871 }
0x14ae   :  { %v874_v26 = vmul.f32 %v872_v22, %v865_v32 }
0x14b0   :  { %876 = vrot.lane.b32.xlu2 %v874_v26, %s1380_s0 }
0x150a   :  { %v877_v58 = vpop.permute.xlu2 %876 }
0x150b   :  { %v879_v60 = vadd.f32 %v877_v58, %v869_v28 }
0x150d   :  { %1189 = vtanh.f32 %v879_v60 }
0x1513   :  { %v1190_v62 = vpop.eup %1189 }
0x1514   :  { %882 = vrot.lane.b32.xlu0 %v1190_v62, %s1380_s0 }
0x1586   :  { %v883_v0 = vpop.permute.xlu0 %882 }
0x1587   :  { %v885_v44 = vmul.f32 %v883_v0, %v865_v32 }
0x1589   :  { %887 = vrot.lane.b32.xlu1 %v885_v44, %s1381_s3 }
0x15fb   :  { %v888_v45 = vpop.permute.xlu1 %887 }
0x15fc   :  { %1127 = vmatmul.msk.f32.vlgmr.msrb.gmra.mxu3 %vm145_vm4, %v888_v45 }
0x167f   :  { %v908_v46 = vpop.f32.mrf.mxu3 }
0x1680   :  { %v909_v47 = vadd.f32 %v1505_v33, %v908_v46 }
0x1682   :  { %v911_v51 = vadd.f32 %v909_v47, %v746_v48 }
0x1684   :  { %v1128_v52 = vmul.f32 -1.442695, %v911_v51 }
0x1686   :  { %1191 = vpow2.f32 %v1128_v52 }
0x168c   :  { %v1192_v19 = vpop.eup %1191 }
0x168d   :  { %v915_v53 = vadd.f32 1.0, %v1192_v19 }
0x168f   :  { %1193 = vrcp.f32 %v915_v53  ;;  %v927_v61 = vand.u32 2147483648, %v915_v53  ;;  %v925_v2 = vand.u32 2147483647, %v915_v53  ;;  %vm921_vm1 = vweird.f32 %v915_v53 }
0x1691   :  { %v928_v3 = vor.u32 1.1754944e-38, %v927_v61  ;;  %vm926_vm3 = vcmp.eq.f32.partialorder %v925_v2, 8.507059e+37 }
0x1695   :  { %v1194_v54 = vpop.eup %1193 }
0x1696   :  { %v917_v56 = vmul.f32 %v1194_v54, %v915_v53  ;;  %vm922_vm0 = vweird.f32 %v1194_v54 }
0x1697   :  { %vm923_vm2 = vmor %vm921_vm1, %vm922_vm0 }
0x1698   :  { %v918_v37 = vsub.f32 1.0, %v917_v56 }
0x169a   :  { %v919_v1 = vmul.f32 %v1194_v54, %v918_v37 }
0x169c   :  { %v920_v20 = vadd.f32 %v1194_v54, %v919_v1 }
0x169e   :  { %v924_v4 = vsel %vm923_vm2, %v1194_v54, %v920_v20 }
0x169f   :  { %v929_v33 = vsel %vm926_vm3, %v928_v3, %v924_v4  ;;  %vm1031_vm3 = vcmask 23552  }
0x16a0   :  { %v931_v5 = vmul.f32 2.0, %v929_v33  ;;  %v933_v12 = vmul.f32 %v929_v33, %v1673_v49 }
0x16a2   :  { %v1129_v7 = vadd.f32 -1.0, %v931_v5 }
0x16a4   :  { %935 = vrot.lane.b32.xlu0 %v1129_v7, %s1380_s0 }
0x1716   :  { %v936_v8 = vpop.permute.xlu0 %935 }
0x1717   :  { %v938_v11 = vmul.f32 %v936_v8, %v929_v33 }
0x1719   :  { %940 = vrot.lane.b32.xlu2 %v938_v11, %s1380_s0 }
0x1773   :  { %v941_v13 = vpop.permute.xlu2 %940 }
0x1774   :  { %v943_v14 = vadd.f32 %v941_v13, %v933_v12 }
0x1776   :  { %1195 = vtanh.f32 %v943_v14 }
0x1777   :  { %1197 = vpow2.f32 %v298_v23 }
0x177c   :  { %v1196_v15 = vpop.eup %1195 }
0x177d   :  { %946 = vrot.lane.b32.xlu1 %v1196_v15, %s1380_s0  ;;  %v1198_v25 = vpop.eup %1197 }
0x177e   :  { %v300_v27 = vsel %vm273_vm9, %v1198_v25, 0.0  ;;  %v303_v39 = vmul.f32 %v1198_v25, %v1569_v6 }
0x1780   :  { %v304_v30 = vsel %vm273_vm9, %v303_v39, 0.0 }
0x17ef   :  { %v947_v16 = vpop.permute.xlu1 %946 }
0x17f0   :  { %v949_v18 = vmul.f32 %v947_v16, %v929_v33 }
0x17f2   :  { %951 = vrot.lane.b32.xlu0 %v949_v18, %s1381_s3 }
0x181c   :  { %301 = vadd.xlane.f32.xlu0 %v300_v27 }
0x1864   :  { %v952_v49 = vpop.permute.xlu0 %951 }
0x1865   :  { %1130 = vmatmul.msk.f32.vlgmr.msra.gmra.mxu0 %vm145_vm4, %v952_v49 }
0x188f   :  { %v302_v51 = vpop.xlane.xlu0 %301 }
0x1890   :  { %v322_v14 = vand.u32 2147483648, %v302_v51  ;;  %vm316_vm7 = vweird.f32 %v302_v51  ;;  %v320_v18 = vand.u32 2147483647, %v302_v51 }
0x1892   :  { %vm321_vm13 = vcmp.eq.f32.partialorder %v320_v18, 8.507059e+37 }
0x18e2   :  { %v972_v31 = vpop.f32.mrf.mxu0 }
0x18e3   :  { %1199 = vtanh.f32 %v972_v31 }
0x18e4   :  { %1201 = vpow2.f32 %v549_v34 }
0x18e9   :  { %v1200_v29 = vpop.eup %1199 }
0x18ea   :  { %v976_v50 = vmul.f32 1.5, %v1200_v29  ;;  %v1202_v36 = vpop.eup %1201 }
0x18eb   :  { %v551_v38 = vsel %vm273_vm9, %v1202_v36, 0.0 }
0x18ec   :  { %v977_v35 = vsel %vm273_vm9, %v976_v50, -inf }
0x18ed   :  { %978 = vmax.xlane.f32.xlu2 %v977_v35  ;;  %v323_v35 = vor.u32 1.1754944e-38, %v322_v14 }
0x18f5   :  { %552 = vadd.xlane.f32.xlu2 %v551_v38 }
0x18fd   :  { %305 = vadd.xlane.f32.xlu2 %v304_v30 }
0x1960   :  { %v1724_v41 = vpop.xlane.xlu2 %978 }
0x1961   :  { %v997_v32 = vsub.f32 %v976_v50, %v1724_v41  ;;  %vm980_vm4 = vcmp.eq.f32.partialorder %v976_v50, %v1724_v41 }
0x1962   :  { %v981_v42 = vsel %vm980_vm4, %v1573_v9, 6  ;;  %v554_v9 = vmul.f32 %v1202_v36, %v1642_v43 }
0x1963   :  { %v998_v22 = vmul.f32 1.442695, %v997_v32  ;;  %v982_v26 = vsel %vm273_vm9, %v981_v42, 2147483647 }
0x1964   :  { %v984_v28 = vshra.s32 %v982_v26, 16  ;;  %v555_v46 = vsel %vm273_vm9, %v554_v9, 0.0 }
0x1965   :  { %1203 = vpow2.f32 %v998_v22 }
0x1966   :  { %1205 = vpow2.f32 %v795_v55  ;;  %v986_v6 = vcvt.s32.f32 %v984_v28 }
0x1967   :  { %1207 = vrcp.f32 %v302_v51 }
0x1968   :  { %987 = vmin.xlane.f32.xlu1 %v986_v6  ;;  %v553_v52 = vpop.xlane.xlu2 %552 }
0x1969   :  { %1209 = vrcp.f32 %v553_v52  ;;  %v573_v21 = vand.u32 2147483648, %v553_v52  ;;  %vm567_vm12 = vweird.f32 %v553_v52  ;;  %v571_v49 = vand.u32 2147483647, %v553_v52 }
0x196a   :  { %1211 = vlog2.f32 %v553_v52 }
0x196b   :  { %v1204_v58 = vpop.eup %1203  ;;  %1213 = vlog2.f32 %v302_v51  ;;  %v574_v39 = vor.u32 1.1754944e-38, %v573_v21  ;;  %vm572_vm15 = vcmp.eq.f32.partialorder %v571_v49, 8.507059e+37 }
0x196c   :  { %v1206_v60 = vpop.eup %1205  ;;  %v1000_v62 = vsel %vm273_vm9, %v1204_v58, 0.0  ;;  %v1003_v47 = vmul.f32 %v1204_v58, %v976_v50 }
0x196d   :  { %1001 = vadd.xlane.f32.xlu0 %v1000_v62  ;;  %v797_v0 = vsel %vm273_vm9, %v1206_v60, 0.0  ;;  %v800_v44 = vmul.f32 %v1206_v60, %v1680_v57  ;;  %v1208_v19 = vpop.eup %1207  ;;  %v983_v57 = vand.u32 65535, %v982_v26 }
0x196e   :  { %v1004_v48 = vsel %vm273_vm9, %v1003_v47, 0.0  ;;  %v312_v54 = vmul.f32 %v1208_v19, %v302_v51 }
0x196f   :  { %v801_v45 = vsel %vm273_vm9, %v800_v44, 0.0  ;;  %v1210_v53 = vpop.eup %1209  ;;  %v985_v37 = vcvt.s32.f32 %v983_v57  ;;  %vm317_vm9 = vweird.f32 %v1208_v19 }
0x1970   :  { %798 = vadd.xlane.f32.xlu1 %v797_v0  ;;  %v563_v43 = vmul.f32 %v1210_v53, %v553_v52  ;;  %v1212_v61 = vpop.eup %1211  ;;  %v313_v1 = vsub.f32 1.0, %v312_v54  ;;  %vm568_vm6 = vweird.f32 %v1210_v53  ;;  %vm1756_vm11 = vmor %vm316_vm7, %vm317_vm9 }
0x1971   :  { %v1214_v3 = vpop.eup %1213  ;;  %v559_v4 = vmul.f32 0.6931472, %v1212_v61  ;;  %vm1766_vm14 = vmor %vm567_vm12, %vm568_vm6 }
0x1972   :  { %v564_v20 = vsub.f32 1.0, %v563_v43  ;;  %v314_v33 = vmul.f32 %v1208_v19, %v313_v1  ;;  %v308_v7 = vmul.f32 0.6931472, %v1214_v3 }
0x1973   :  { %v1747_v12 = vadd.f32 %v559_v4, %v1646_v24 }
0x1974   :  { %v565_v8 = vmul.f32 %v1210_v53, %v564_v20  ;;  %v315_v13 = vadd.f32 %v1208_v19, %v314_v33  ;;  %v1751_v15 = vadd.f32 %v308_v7, %v1575_v10 }
0x1975   :  { %802 = vadd.xlane.f32.xlu0 %v801_v45  ;;  %v561_v27 = vsub.f32 %v1646_v24, %v1747_v12  ;;  %v306_v45 = vpop.xlane.xlu2 %305 }
0x1976   :  { %v566_v16 = vadd.f32 %v1210_v53, %v565_v8  ;;  %v319_v59 = vsel %vm1756_vm11, %v1208_v19, %v315_v13  ;;  %v310_v50 = vsub.f32 %v1575_v10, %v1751_v15 }
0x1977   :  { %v324_v32 = vsel %vm321_vm13, %v323_v35, %v319_v59 }
0x1978   :  { %556 = vadd.xlane.f32.xlu1 %v555_v46  ;;  %v570_v24 = vsel %vm1766_vm14, %v1210_v53, %v566_v16  ;;  %v1035_v22 = vsel %vm1027_vm8, %v310_v50, %v561_v27  ;;  %v325_v43 = vmul.f32 %v324_v32, %v306_v45 }
0x1979   :  { %v575_v28 = vsel %vm572_vm15, %v574_v39, %v570_v24 }
0x197a   :  { %v326_v7 = vsub.f32 %v1751_v15, %v325_v43 }
0x1980   :  { %1005 = vadd.xlane.f32.xlu1 %v1004_v48 }
0x19db   :  { %v1737_v56 = vpop.xlane.xlu1 %987 }
0x19dc   :  { %vm989_vm5 = vcmp.eq.f32.partialorder %v986_v6, %v1737_v56  ;;  %v994_v15 = vcvt.f32.s32 %v1737_v56 }
0x19dd   :  { %v990_v2 = vsel %vm989_vm5, %v985_v37, inf  ;;  %vm1033_vm5 = vcmask 25600  }
0x19de   :  { %991 = vmin.xlane.f32.xlu2 %v990_v2  ;;  %v995_v18 = vshll.u32 %v994_v15, 16 }
0x19e0   :  { %v1740_v5 = vpop.xlane.xlu0 %1001 }
0x19e1   :  { %1215 = vrcp.f32 %v1740_v5  ;;  %vm1016_vm1 = vweird.f32 %v1740_v5  ;;  %v1022_v60 = vand.u32 2147483648, %v1740_v5  ;;  %v1020_v9 = vand.u32 2147483647, %v1740_v5 }
0x19e2   :  { %1217 = vlog2.f32 %v1740_v5 }
0x19e3   :  { %v1744_v11 = vpop.xlane.xlu1 %798  ;;  %v1023_v54 = vor.u32 1.1754944e-38, %v1022_v60  ;;  %vm1021_vm7 = vcmp.eq.f32.partialorder %v1020_v9, 8.507059e+37 }
0x19e4   :  { %1219 = vrcp.f32 %v1744_v11  ;;  %v819_v0 = vand.u32 2147483648, %v1744_v11  ;;  %v817_v47 = vand.u32 2147483647, %v1744_v11  ;;  %vm813_vm9 = vweird.f32 %v1744_v11 }
0x19e5   :  { %1221 = vlog2.f32 %v1744_v11 }
0x19e6   :  { %v820_v37 = vor.u32 1.1754944e-38, %v819_v0  ;;  %vm818_vm11 = vcmp.eq.f32.partialorder %v817_v47, 8.507059e+37 }
0x19e7   :  { %v1754_v23 = vpop.eup %1215 }
0x19e8   :  { %v1218_v31 = vpop.eup %1217  ;;  %v1012_v34 = vmul.f32 %v1754_v23, %v1740_v5  ;;  %vm1017_vm0 = vweird.f32 %v1754_v23  ;;  %v803_v4 = vpop.xlane.xlu0 %802 }
0x19e9   :  { %v1008_v36 = vmul.f32 0.6931472, %v1218_v31  ;;  %vm1786_vm4 = vmor %vm1016_vm1, %vm1017_vm0 }
0x19ea   :  { %v1220_v38 = vpop.eup %1219  ;;  %v1013_v30 = vsub.f32 1.0, %v1012_v34 }
0x19eb   :  { %v1222_v40 = vpop.eup %1221  ;;  %v809_v55 = vmul.f32 %v1220_v38, %v1744_v11  ;;  %v557_v42 = vpop.xlane.xlu1 %556  ;;  %v1009_v58 = vadd.f32 %v1008_v36, %v1724_v41  ;;  %vm814_vm2 = vweird.f32 %v1220_v38 }
0x19ec   :  { %v805_v26 = vmul.f32 0.6931472, %v1222_v40  ;;  %v1014_v10 = vmul.f32 %v1754_v23, %v1013_v30  ;;  %v576_v52 = vmul.f32 %v575_v28, %v557_v42  ;;  %vm815_vm6 = vmor %vm813_vm9, %vm814_vm2 }
0x19ed   :  { %v810_v6 = vsub.f32 1.0, %v809_v55  ;;  %v1010_v57 = vsub.f32 %v1724_v41, %v1009_v58 }
0x19ee   :  { %v806_v62 = vadd.f32 %v805_v26, %v1684_v63  ;;  %v1015_v44 = vadd.f32 %v1754_v23, %v1014_v10  ;;  %v577_v41 = vsub.f32 %v1747_v12, %v576_v52 }
0x19ef   :  { %v811_v46 = vmul.f32 %v1220_v38, %v810_v6 }
0x19f0   :  { %v807_v51 = vsub.f32 %v1684_v63, %v806_v62  ;;  %v1019_v19 = vsel %vm1786_vm4, %v1754_v23, %v1015_v44  ;;  %v1039_v11 = vsel %vm1027_vm8, %v326_v7, %v577_v41 }
0x19f1   :  { %v812_v53 = vadd.f32 %v1220_v38, %v811_v46  ;;  %v1024_v2 = vsel %vm1021_vm7, %v1023_v54, %v1019_v19 }
0x19f2   :  { %v1036_v61 = vsel %vm1029_vm10, %v1035_v22, %v807_v51 }
0x19f3   :  { %v816_v63 = vsel %vm815_vm6, %v1220_v38, %v812_v53  ;;  %v1006_v1 = vpop.xlane.xlu1 %1005  ;;  %v1037_v20 = vsel %vm1031_vm3, %v1036_v61, %v1010_v57 }
0x19f4   :  { %v821_v3 = vsel %vm818_vm11, %v820_v37, %v816_v63  ;;  %v1025_v33 = vmul.f32 %v1024_v2, %v1006_v1  ;;  %1038 = vst.msk [vmem:[#allocation9] sm:$0x3] %vm1033_vm5, %v1037_v20 }
0x19f5   :  { %v822_v5 = vmul.f32 %v821_v3, %v803_v4  ;;  %1064 = dma.vmem_to_hbm [thread:$0]  %s1060_s27, 32, %s1062_s1, [#allocation10]  }
0x19f6   :  { %v1026_v13 = vsub.f32 %v1009_v58, %v1025_v33 }
0x19f7   :  { %v823_v8 = vsub.f32 %v806_v62, %v822_v5 }
0x19f9   :  { %v1040_v14 = vsel %vm1029_vm10, %v1039_v11, %v823_v8 }
0x19fa   :  { %v1041_v12 = vsel %vm1031_vm3, %v1040_v14, %v1026_v13 }
0x19fb   :  { %1042 = vst.msk [vmem:[#allocation11] sm:$0x3] %vm1033_vm5, %v1041_v12 }
0x19fc   :  { %1075 = dma.vmem_to_hbm [thread:$0]  %s1071_s29, 32, %s1073_s30, [#allocation10]  }
0x1a51   :  { %v992_v16 = vpop.xlane.xlu2 %991 }
0x1a52   :  { %v993_v21 = vcvt.f32.s32 %v992_v16 }
0x1a54   :  { %v996_v23 = vadd.s32 %v995_v18, %v993_v21 }
0x1a56   :  { %v1032_v25 = vsel %vm1031_vm3, %v1695_v17, %v996_v23 }
0x1a57   :  { %1034 = vst.msk [vmem:[#allocation8] sm:$0x3] %vm1033_vm5, %v1032_v25 }
0x1a58   :  { %1053 = dma.vmem_to_hbm [thread:$0]  %s1049_s10, 32, %s1051_s14, [#allocation4]  }
0x1a59   :  { %1371 = dma.done.wait [#allocation4], 32  }
0x1a5a   :  { %1372 = vsyncadd [#allocation4], 4294967264 }
0x1a5b   :  { %1373 = dma.done.wait [#allocation10], 64  }
0x1a5c   :  { %1374 = vsyncadd [#allocation10], 4294967232 }
0x1a5d   :  { %1088 = vsyncpa [#allocation3], 1 }
0x1a5e   :  { %1089 = vsyncpa [#allocation6], 1 }
0x1a5f   :  { %1090 = vsyncpa [#allocation4], 1 }
0x1a60   :  { %1091 = vsyncpa [#allocation10], 1 }

</bundles_post_ra>
